<compile_context>
chip_gen: v6e
topology: v6e:2x2x1
jax: 0.10.0
libtpu: 0.0.40
codegen_flags: <defaults>
</compile_context>

<pallas_src>
import math

import jax
import jax.numpy as jnp
from jax.experimental import pallas as pl
from jax.experimental.pallas import tpu as pltpu

# ---------------- small, module-consistent configuration ----------------
B = 2            # b  (batch of tasks)
N = 3            # n  (classes / targets per task)
K = 1            # k  (support examples per class)
H_IMG = W_IMG = 16
D = 128          # d  (feature dim, divisible by HEADS)
HEADS = 4
DH = D // HEADS
LAYERS = 2       # attention layers
C_IN = 3
C_MID = 32       # stand-in CNN stem width
S = N * (K + 1)  # 6 real tokens per task
S_PAD = 8        # token rows padded to a full sublane tile
LN_EPS = 1e-5
H_OUT = (H_IMG + 2 - 3) // 2 + 1                 # 8
P_PATCH = H_OUT * H_OUT                          # 64 conv output positions / image
F_IN = C_IN * 9                                  # 27 (3x3 patch, 3 channels)
F_IN_PAD = 32                                    # pad contraction dim to 32
POS_PER_ROW = 128 // F_IN_PAD                    # 4 positions packed per 128-lane row
PP_ROWS = P_PATCH // POS_PER_ROW                 # 16 packed rows per image
N_PAD = 128                                      # lane-dense head output width
NEG_INF = -1e9


def _pick_tasks_per_step():
    """One task per grid step (parallel grid=(B,)) on dual-TC v7x; fold the whole
    batch into a single slab on single-TensorCore v5e/v6e."""
    try:
        kind = jax.devices()[0].device_kind.lower()
    except Exception:
        kind = ""
    return 1 if "v7" in kind else B


TPS = _pick_tasks_per_step()      # tasks per grid step
G = B // TPS                      # grid size
T = TPS * S_PAD                   # token rows per kernel invocation (8 or 16)
RP = TPS * S * PP_ROWS            # packed patch rows per kernel invocation (96 or 192)


# ============================ fused Pallas kernel ============================

def fused_forward_kernel(patch_ref, pool_ref, stem_w_ref, misc_ref,
                         attn_w_ref, attn_b_ref, mask_ref, head_w_ref, o_ref):
    """Entire forward for TPS tasks per grid step; everything VMEM-resident."""
    bf16 = jnp.bfloat16
    f32 = jnp.float32

    # ---- stand-in CNN stem: lane-packed conv matmul -> SiLU -> pool -> proj ----
    # TODO(synk): efficientnet_b0 replaced by this deterministic fused conv stem.
    p = patch_ref[0]                                               # (RP, 128) bf16
    f = jnp.dot(p, stem_w_ref[0], preferred_element_type=f32) + misc_ref[T:T + 1, :]
    f = f * jax.nn.sigmoid(f)                                      # SiLU, f32, full lanes
    pooled = jnp.dot(pool_ref[...], f.astype(bf16),
                     preferred_element_type=f32)                   # (T, 128)
    feats = (jnp.dot(pooled.astype(bf16), stem_w_ref[1],
                     preferred_element_type=f32)
             + misc_ref[T + 1:T + 2, :])                           # (T, D)

    # ---- add input_target / output_target token biases ----
    out = feats + misc_ref[0:T, :]                                 # (T, D)
    mask = mask_ref[...][None, :, :]                               # (1, T, T) additive

    # ---- attention layers (static unroll; all weights VMEM-resident) ----
    for l in range(LAYERS):
        x = out
        # fused QKV projection; 1/sqrt(DH) folded into the Q weights/bias
        qkv = jnp.dot(x.astype(bf16), attn_w_ref[l, :, 0:3 * D],
                      preferred_element_type=f32)                  # (T, 3D)
        q = qkv[:, 0 * D:1 * D] + attn_b_ref[l, 0:1, :]
        k = qkv[:, 1 * D:2 * D] + attn_b_ref[l, 1:2, :]
        v = qkv[:, 2 * D:3 * D] + attn_b_ref[l, 2:3, :]

        # batched head math: (HEADS, T, DH) stacks, ONE softmax over all heads
        qh = jnp.stack([q[:, h * DH:(h + 1) * DH] for h in range(HEADS)], 0).astype(bf16)
        kh = jnp.stack([k[:, h * DH:(h + 1) * DH] for h in range(HEADS)], 0).astype(bf16)
        vh = jnp.stack([v[:, h * DH:(h + 1) * DH] for h in range(HEADS)], 0).astype(bf16)

        s = jnp.einsum('hqd,hkd->hqk', qh, kh,
                       preferred_element_type=f32) + mask          # (H, T, T)
        s = s - jnp.max(s, axis=-1, keepdims=True)
        e = jnp.exp(s)
        pattn = e * pl.reciprocal(jnp.sum(e, axis=-1, keepdims=True), approx=True)
        ctx = jnp.einsum('hqk,hkd->hqd', pattn.astype(bf16), vh,
                         preferred_element_type=f32)               # (H, T, DH)
        ctx = jnp.concatenate([ctx[h] for h in range(HEADS)], axis=-1)   # (T, D)

        attn_out = (jnp.dot(ctx.astype(bf16), attn_w_ref[l, :, 3 * D:4 * D],
                            preferred_element_type=f32) + attn_b_ref[l, 3:4, :])

        # feedfwd: LayerNorm(Linear(ELU(Linear(attn_out))) + residual(x))
        t = (jnp.dot(attn_out.astype(bf16), attn_w_ref[l, :, 4 * D:5 * D],
                     preferred_element_type=f32) + attn_b_ref[l, 4:5, :])
        t = jnp.where(t > 0, t, jnp.exp(t) - 1.0)                  # ELU(alpha=1)
        t = (jnp.dot(t.astype(bf16), attn_w_ref[l, :, 5 * D:6 * D],
                     preferred_element_type=f32) + attn_b_ref[l, 5:6, :])
        y = t + x
        mu = jnp.mean(y, axis=-1, keepdims=True)
        var = jnp.mean(y * y, axis=-1, keepdims=True) - mu * mu
        out = ((y - mu) * jax.lax.rsqrt(var + LN_EPS) * attn_b_ref[l, 6:7, :]
               + attn_b_ref[l, 7:8, :])

    # ---- linear head (lane-dense, zero-padded to 128 columns) ----
    o_ref[0] = jnp.dot(out.astype(bf16), head_w_ref[...], preferred_element_type=f32)


# ============================ pallas_call wrapper ============================

def run_fused(patches, p):
    def full(a):
        nd = a.ndim
        return pl.BlockSpec(a.shape, lambda g, _nd=nd: (0,) * _nd)

    return pl.pallas_call(
        fused_forward_kernel,
        out_shape=jax.ShapeDtypeStruct((G, T, N_PAD), jnp.float32),
        grid=(G,),
        in_specs=[
            pl.BlockSpec((1, RP, 128), lambda g: (g, 0, 0)),       # packed patches
            full(p["pool_mat"]), full(p["stem_w"]), full(p["misc"]),
            full(p["attn_w"]), full(p["attn_b"]), full(p["mask"]), full(p["head_w"]),
        ],
        out_specs=pl.BlockSpec((1, T, N_PAD), lambda g: (g, 0, 0)),
        compiler_params=pltpu.CompilerParams(dimension_semantics=("parallel",)),
    )(patches, p["pool_mat"], p["stem_w"], p["misc"],
      p["attn_w"], p["attn_b"], p["mask"], p["head_w"])


# ============================ glue ============================

def im2col(x):
    """x: (Nimg, C_IN, H, W) -> (Nimg, P_PATCH, C_IN*9); 3x3 kernel, stride 2, pad 1."""
    n_img = x.shape[0]
    xp = jnp.pad(x, ((0, 0), (0, 0), (1, 1), (1, 1)))
    cols = []
    for dy in range(3):
        for dx in range(3):
            cols.append(xp[:, :, dy:dy + 2 * H_OUT - 1:2, dx:dx + 2 * H_OUT - 1:2])
    patches = jnp.stack(cols, axis=2)                       # (Nimg, C, 9, Ho, Wo)
    patches = patches.transpose(0, 3, 4, 1, 2).reshape(n_img, P_PATCH, F_IN)
    return patches


def init_params(key):
    keys = iter(jax.random.split(key, 64))

    def rnd(shape, scale=0.02):
        return (scale * jax.random.normal(next(keys), shape)).astype(jnp.float32)

    # Parameter(torch.randn(n, d) / sqrt(d*n)) and torch.randn(d) / sqrt(d)
    input_target = (jax.random.normal(next(keys), (N, D)) /
                    math.sqrt(D * N)).astype(jnp.float32)
    output_target = (jax.random.normal(next(keys), (D,)) /
                     math.sqrt(D)).astype(jnp.float32)

    scale = 1.0 / math.sqrt(DH)      # attention scale, folded into Q projection
    attn_w, attn_b = [], []
    for _ in range(LAYERS):
        wq, wk, wv, wo, w1, w2 = (rnd((D, D)) for _ in range(6))
        bq = bk = bv = bo = jnp.zeros((D,), jnp.float32)
        b1, b2 = rnd((D,)), rnd((D,))
        gamma = jnp.ones((D,), jnp.float32)
        beta = jnp.zeros((D,), jnp.float32)
        attn_w.append(jnp.concatenate([wq * scale, wk, wv, wo, w1, w2], axis=1))  # (D, 6D)
        attn_b.append(jnp.stack([bq * scale, bk, bv, bo, b1, b2, gamma, beta], 0))  # (8, D)
    attn_w = jnp.stack(attn_w).astype(jnp.bfloat16)          # (L, D, 6D) bf16
    attn_b = jnp.stack(attn_b)                               # (L, 8, D)  f32

    # stand-in stem: block-diagonal conv weight (4 positions per 128-lane row),
    # lane-group fold absorbed into a tiled projection weight.
    wconv = rnd((F_IN_PAD, C_MID))
    wconv_blk = jnp.kron(jnp.eye(POS_PER_ROW, dtype=jnp.float32), wconv)   # (128, 128)
    bconv = jnp.tile(jnp.zeros((C_MID,), jnp.float32), POS_PER_ROW)        # (128,)
    wproj = rnd((C_MID, D))
    wproj_packed = jnp.tile(wproj, (POS_PER_ROW, 1))                       # (128, D)
    bproj = jnp.zeros((D,), jnp.float32)
    stem_w = jnp.stack([wconv_blk, wproj_packed]).astype(jnp.bfloat16)     # (2,128,128)

    # per-token average pool over its 16 packed rows (1/64), zero rows for pad tokens
    pool = jnp.zeros((T, RP), jnp.float32)
    for tau in range(TPS):
        for i in range(S):
            t = tau * S_PAD + i
            r0 = tau * S * PP_ROWS + i * PP_ROWS
            pool = pool.at[t, r0:r0 + PP_ROWS].set(1.0 / P_PATCH)
    pool_mat = pool.astype(jnp.bfloat16)

    # token-position additive bias (identical per task); padded rows are zero
    tb = jnp.zeros((N, K + 1, D), jnp.float32)
    tb = tb.at[:, :K, :].add(input_target[:, None, :])
    tb = tb.at[:, K, :].add(output_target)
    tb = jnp.concatenate([tb.reshape(S, D), jnp.zeros((S_PAD - S, D), jnp.float32)], 0)
    tok_bias = jnp.tile(tb, (TPS, 1))                                      # (T, D)
    misc = jnp.concatenate([tok_bias, bconv[None, :], bproj[None, :]], 0)  # (T+2, 128)

    # block-diagonal attention mask: same task only, never attend to padded columns
    tok = jnp.arange(T)
    same_task = (tok[:, None] // S_PAD) == (tok[None, :] // S_PAD)
    real_col = (tok[None, :] % S_PAD) < S
    mask = jnp.where(same_task & real_col, 0.0, NEG_INF).astype(jnp.float32)  # (T, T)

    # lane-dense head weight: first N columns = input_target.T, rest zero
    head_w = (jnp.zeros((D, N_PAD), jnp.float32)
              .at[:, :N].set(input_target.T).astype(jnp.bfloat16))

    return dict(pool_mat=pool_mat, stem_w=stem_w, misc=misc,
                attn_w=attn_w, attn_b=attn_b, mask=mask, head_w=head_w,
                input_target=input_target, output_target=output_target)


def forward(x, params, is_train=False):
    n_img = B * S
    # x.reshape(b*n*(k+1), 1, h, w).broadcast_to(..., 3, h, w)
    x = x.reshape(n_img, 1, H_IMG, W_IMG)
    x = jnp.broadcast_to(x, (n_img, C_IN, H_IMG, W_IMG))

    patches = im2col(x)                                              # (n_img, 64, 27)
    patches = jnp.pad(patches, ((0, 0), (0, 0), (0, F_IN_PAD - F_IN)))
    patches = patches.reshape(n_img, PP_ROWS, POS_PER_ROW * F_IN_PAD)  # (n_img, 16, 128)
    patches = patches.reshape(G, RP, 128).astype(jnp.bfloat16)

    yhat_pad = run_fused(patches, params)                            # (G, T, 128) f32
    yhat = yhat_pad.reshape(B, S_PAD, N_PAD)[:, :S, :]
    yhat = yhat.reshape(B, N, K + 1, N_PAD)[:, :, K, :N].reshape(B * N, N)

    if is_train:
        y = jnp.tile(jnp.arange(N), B)                               # buffer 'y'
        logz = jax.nn.logsumexp(yhat, axis=-1)
        nll = logz - yhat[jnp.arange(B * N), y]
        return jnp.mean(nll)
    return yhat


if __name__ == "__main__":
    root = jax.random.PRNGKey(0)
    k_in, k_par = jax.random.split(root)
    x = jax.random.normal(k_in, (B, N, K + 1, H_IMG, W_IMG), jnp.float32)
    params = init_params(k_par)

    fwd_eval = jax.jit(lambda inp: forward(inp, params, is_train=False))
    yhat = jax.block_until_ready(fwd_eval(x))
    assert yhat.shape == (B * N, N), yhat.shape
    assert bool(jnp.all(jnp.isfinite(yhat)))

    fwd_train = jax.jit(lambda inp: forward(inp, params, is_train=True))
    loss = jax.block_until_ready(fwd_train(x))
    assert bool(jnp.isfinite(loss))

    print("KERNEL_OK")
</pallas_src>

<mosaic_0001>
module attributes {stable_mosaic.version = 11 : i64} {
  func.func @fused_forward_kernel(%arg0: i32, %arg1: memref<1x192x128xbf16, #tpu.memory_space<vmem>>, %arg2: memref<16x192xbf16, #tpu.memory_space<vmem>>, %arg3: memref<2x128x128xbf16, #tpu.memory_space<vmem>>, %arg4: memref<18x128xf32, #tpu.memory_space<vmem>>, %arg5: memref<2x128x768xbf16, #tpu.memory_space<vmem>>, %arg6: memref<2x8x128xf32, #tpu.memory_space<vmem>>, %arg7: memref<16x16xf32, #tpu.memory_space<vmem>>, %arg8: memref<128x128xbf16, #tpu.memory_space<vmem>>, %arg9: memref<1x16x128xf32, #tpu.memory_space<vmem>>) attributes {dimension_semantics = [#tpu.dimension_semantics<parallel>], iteration_bounds = array<i64: 1>, scalar_prefetch = 0 : i64, scratch_operands = 0 : i64, tpu.core_type = #tpu.core_type<tc>, window_params = [{transform_indices = @transform_0, window_bounds = array<i64: 1, 192, 128>}, {pipeline_mode = #tpu.pipeline_mode<synchronous>, transform_indices = @transform_1, window_bounds = array<i64: 16, 192>}, {pipeline_mode = #tpu.pipeline_mode<synchronous>, transform_indices = @transform_2, window_bounds = array<i64: 2, 128, 128>}, {pipeline_mode = #tpu.pipeline_mode<synchronous>, transform_indices = @transform_3, window_bounds = array<i64: 18, 128>}, {pipeline_mode = #tpu.pipeline_mode<synchronous>, transform_indices = @transform_4, window_bounds = array<i64: 2, 128, 768>}, {pipeline_mode = #tpu.pipeline_mode<synchronous>, transform_indices = @transform_5, window_bounds = array<i64: 2, 8, 128>}, {pipeline_mode = #tpu.pipeline_mode<synchronous>, transform_indices = @transform_6, window_bounds = array<i64: 16, 16>}, {pipeline_mode = #tpu.pipeline_mode<synchronous>, transform_indices = @transform_7, window_bounds = array<i64: 128, 128>}, {transform_indices = @transform_8, window_bounds = array<i64: 1, 16, 128>}]} {
    %c0 = arith.constant 0 : index
    %c0_0 = arith.constant 0 : index
    %c0_1 = arith.constant 0 : index
    %0 = vector.load %arg1[%c0, %c0_0, %c0_1] : memref<1x192x128xbf16, #tpu.memory_space<vmem>>, vector<1x192x128xbf16>
    %1 = vector.shape_cast %0 : vector<1x192x128xbf16> to vector<192x128xbf16>
    %c0_2 = arith.constant 0 : index
    %c0_3 = arith.constant 0 : index
    %c0_4 = arith.constant 0 : index
    %2 = vector.load %arg3[%c0_2, %c0_3, %c0_4] : memref<2x128x128xbf16, #tpu.memory_space<vmem>>, vector<1x128x128xbf16>
    %3 = vector.shape_cast %2 : vector<1x128x128xbf16> to vector<128x128xbf16>
    %cst = arith.constant dense<0.000000e+00> : vector<192x128xf32>
    %4 = tpu.matmul %1, %3, %cst {dimension_numbers = #tpu.dot_dimension_numbers<[1], [0], [0], [1], [0, 0, 1, 1], [], []>} : vector<192x128xbf16>, vector<128x128xbf16>, vector<192x128xf32> -> vector<192x128xf32>
    %c16 = arith.constant 16 : index
    %c0_5 = arith.constant 0 : index
    %5 = vector.load %arg4[%c16, %c0_5] : memref<18x128xf32, #tpu.memory_space<vmem>>, vector<1x128xf32>
    %6 = vector.broadcast %5 : vector<1x128xf32> to vector<192x128xf32>
    %7 = arith.addf %4, %6 : vector<192x128xf32>
    %8 = arith.negf %7 : vector<192x128xf32>
    %9 = math.exp %8 : vector<192x128xf32>
    %cst_6 = arith.constant 1.000000e+00 : f32
    %10 = vector.broadcast %cst_6 : f32 to vector<192x128xf32>
    %11 = arith.addf %10, %9 : vector<192x128xf32>
    %12 = arith.divf %10, %11 : vector<192x128xf32>
    %13 = arith.mulf %7, %12 : vector<192x128xf32>
    %c0_7 = arith.constant 0 : index
    %c0_8 = arith.constant 0 : index
    %14 = vector.load %arg2[%c0_7, %c0_8] : memref<16x192xbf16, #tpu.memory_space<vmem>>, vector<16x192xbf16>
    %15 = arith.truncf %13 : vector<192x128xf32> to vector<192x128xbf16>
    %cst_9 = arith.constant dense<0.000000e+00> : vector<16x128xf32>
    %16 = tpu.matmul %14, %15, %cst_9 {dimension_numbers = #tpu.dot_dimension_numbers<[1], [0], [0], [1], [0, 0, 1, 1], [], []>} : vector<16x192xbf16>, vector<192x128xbf16>, vector<16x128xf32> -> vector<16x128xf32>
    %17 = arith.truncf %16 : vector<16x128xf32> to vector<16x128xbf16>
    %c1 = arith.constant 1 : index
    %c0_10 = arith.constant 0 : index
    %c0_11 = arith.constant 0 : index
    %18 = vector.load %arg3[%c1, %c0_10, %c0_11] : memref<2x128x128xbf16, #tpu.memory_space<vmem>>, vector<1x128x128xbf16>
    %19 = vector.shape_cast %18 : vector<1x128x128xbf16> to vector<128x128xbf16>
    %cst_12 = arith.constant dense<0.000000e+00> : vector<16x128xf32>
    %20 = tpu.matmul %17, %19, %cst_12 {dimension_numbers = #tpu.dot_dimension_numbers<[1], [0], [0], [1], [0, 0, 1, 1], [], []>} : vector<16x128xbf16>, vector<128x128xbf16>, vector<16x128xf32> -> vector<16x128xf32>
    %c17 = arith.constant 17 : index
    %c0_13 = arith.constant 0 : index
    %21 = vector.load %arg4[%c17, %c0_13] : memref<18x128xf32, #tpu.memory_space<vmem>>, vector<1x128xf32>
    %22 = vector.broadcast %21 : vector<1x128xf32> to vector<16x128xf32>
    %23 = arith.addf %20, %22 : vector<16x128xf32>
    %c0_14 = arith.constant 0 : index
    %c0_15 = arith.constant 0 : index
    %24 = vector.load %arg4[%c0_14, %c0_15] : memref<18x128xf32, #tpu.memory_space<vmem>>, vector<16x128xf32>
    %25 = arith.addf %23, %24 : vector<16x128xf32>
    %c0_16 = arith.constant 0 : index
    %c0_17 = arith.constant 0 : index
    %26 = vector.load %arg7[%c0_16, %c0_17] : memref<16x16xf32, #tpu.memory_space<vmem>>, vector<16x16xf32>
    %27 = vector.shape_cast %26 : vector<16x16xf32> to vector<1x16x16xf32>
    %28 = arith.truncf %25 : vector<16x128xf32> to vector<16x128xbf16>
    %c0_18 = arith.constant 0 : index
    %c0_19 = arith.constant 0 : index
    %c0_20 = arith.constant 0 : index
    %29 = vector.load %arg5[%c0_18, %c0_19, %c0_20] : memref<2x128x768xbf16, #tpu.memory_space<vmem>>, vector<1x128x384xbf16>
    %30 = vector.shape_cast %29 : vector<1x128x384xbf16> to vector<128x384xbf16>
    %cst_21 = arith.constant dense<0.000000e+00> : vector<16x384xf32>
    %31 = tpu.matmul %28, %30, %cst_21 {dimension_numbers = #tpu.dot_dimension_numbers<[1], [0], [0], [1], [0, 0, 1, 1], [], []>} : vector<16x128xbf16>, vector<128x384xbf16>, vector<16x384xf32> -> vector<16x384xf32>
    %32 = vector.extract_strided_slice %31 {offsets = [0, 0], sizes = [16, 128], strides = [1, 1]} : vector<16x384xf32> to vector<16x128xf32>
    %c0_22 = arith.constant 0 : index
    %c0_23 = arith.constant 0 : index
    %c0_24 = arith.constant 0 : index
    %33 = vector.load %arg6[%c0_22, %c0_23, %c0_24] : memref<2x8x128xf32, #tpu.memory_space<vmem>>, vector<1x1x128xf32>
    %34 = vector.shape_cast %33 : vector<1x1x128xf32> to vector<1x128xf32>
    %35 = vector.broadcast %34 : vector<1x128xf32> to vector<16x128xf32>
    %36 = arith.addf %32, %35 : vector<16x128xf32>
    %37 = vector.extract_strided_slice %31 {offsets = [0, 128], sizes = [16, 128], strides = [1, 1]} : vector<16x384xf32> to vector<16x128xf32>
    %c0_25 = arith.constant 0 : index
    %c1_26 = arith.constant 1 : index
    %c0_27 = arith.constant 0 : index
    %38 = vector.load %arg6[%c0_25, %c1_26, %c0_27] : memref<2x8x128xf32, #tpu.memory_space<vmem>>, vector<1x1x128xf32>
    %39 = vector.shape_cast %38 : vector<1x1x128xf32> to vector<1x128xf32>
    %40 = vector.broadcast %39 : vector<1x128xf32> to vector<16x128xf32>
    %41 = arith.addf %37, %40 : vector<16x128xf32>
    %42 = vector.extract_strided_slice %31 {offsets = [0, 256], sizes = [16, 128], strides = [1, 1]} : vector<16x384xf32> to vector<16x128xf32>
    %c0_28 = arith.constant 0 : index
    %c2 = arith.constant 2 : index
    %c0_29 = arith.constant 0 : index
    %43 = vector.load %arg6[%c0_28, %c2, %c0_29] : memref<2x8x128xf32, #tpu.memory_space<vmem>>, vector<1x1x128xf32>
    %44 = vector.shape_cast %43 : vector<1x1x128xf32> to vector<1x128xf32>
    %45 = vector.broadcast %44 : vector<1x128xf32> to vector<16x128xf32>
    %46 = arith.addf %42, %45 : vector<16x128xf32>
    %47 = vector.extract_strided_slice %36 {offsets = [0, 0], sizes = [16, 32], strides = [1, 1]} : vector<16x128xf32> to vector<16x32xf32>
    %48 = vector.extract_strided_slice %36 {offsets = [0, 32], sizes = [16, 32], strides = [1, 1]} : vector<16x128xf32> to vector<16x32xf32>
    %49 = vector.extract_strided_slice %36 {offsets = [0, 64], sizes = [16, 32], strides = [1, 1]} : vector<16x128xf32> to vector<16x32xf32>
    %50 = vector.extract_strided_slice %36 {offsets = [0, 96], sizes = [16, 32], strides = [1, 1]} : vector<16x128xf32> to vector<16x32xf32>
    %51 = vector.shape_cast %47 : vector<16x32xf32> to vector<1x16x32xf32>
    %52 = vector.shape_cast %48 : vector<16x32xf32> to vector<1x16x32xf32>
    %53 = vector.shape_cast %49 : vector<16x32xf32> to vector<1x16x32xf32>
    %54 = vector.shape_cast %50 : vector<16x32xf32> to vector<1x16x32xf32>
    %55 = tpu.concatenate %51, %52, %53, %54 in 0 : vector<1x16x32xf32>, vector<1x16x32xf32>, vector<1x16x32xf32>, vector<1x16x32xf32> -> vector<4x16x32xf32>
    %56 = arith.truncf %55 : vector<4x16x32xf32> to vector<4x16x32xbf16>
    %57 = vector.extract_strided_slice %41 {offsets = [0, 0], sizes = [16, 32], strides = [1, 1]} : vector<16x128xf32> to vector<16x32xf32>
    %58 = vector.extract_strided_slice %41 {offsets = [0, 32], sizes = [16, 32], strides = [1, 1]} : vector<16x128xf32> to vector<16x32xf32>
    %59 = vector.extract_strided_slice %41 {offsets = [0, 64], sizes = [16, 32], strides = [1, 1]} : vector<16x128xf32> to vector<16x32xf32>
    %60 = vector.extract_strided_slice %41 {offsets = [0, 96], sizes = [16, 32], strides = [1, 1]} : vector<16x128xf32> to vector<16x32xf32>
    %61 = vector.shape_cast %57 : vector<16x32xf32> to vector<1x16x32xf32>
    %62 = vector.shape_cast %58 : vector<16x32xf32> to vector<1x16x32xf32>
    %63 = vector.shape_cast %59 : vector<16x32xf32> to vector<1x16x32xf32>
    %64 = vector.shape_cast %60 : vector<16x32xf32> to vector<1x16x32xf32>
    %65 = tpu.concatenate %61, %62, %63, %64 in 0 : vector<1x16x32xf32>, vector<1x16x32xf32>, vector<1x16x32xf32>, vector<1x16x32xf32> -> vector<4x16x32xf32>
    %66 = arith.truncf %65 : vector<4x16x32xf32> to vector<4x16x32xbf16>
    %67 = vector.extract_strided_slice %46 {offsets = [0, 0], sizes = [16, 32], strides = [1, 1]} : vector<16x128xf32> to vector<16x32xf32>
    %68 = vector.extract_strided_slice %46 {offsets = [0, 32], sizes = [16, 32], strides = [1, 1]} : vector<16x128xf32> to vector<16x32xf32>
    %69 = vector.extract_strided_slice %46 {offsets = [0, 64], sizes = [16, 32], strides = [1, 1]} : vector<16x128xf32> to vector<16x32xf32>
    %70 = vector.extract_strided_slice %46 {offsets = [0, 96], sizes = [16, 32], strides = [1, 1]} : vector<16x128xf32> to vector<16x32xf32>
    %71 = vector.shape_cast %67 : vector<16x32xf32> to vector<1x16x32xf32>
    %72 = vector.shape_cast %68 : vector<16x32xf32> to vector<1x16x32xf32>
    %73 = vector.shape_cast %69 : vector<16x32xf32> to vector<1x16x32xf32>
    %74 = vector.shape_cast %70 : vector<16x32xf32> to vector<1x16x32xf32>
    %75 = tpu.concatenate %71, %72, %73, %74 in 0 : vector<1x16x32xf32>, vector<1x16x32xf32>, vector<1x16x32xf32>, vector<1x16x32xf32> -> vector<4x16x32xf32>
    %76 = arith.truncf %75 : vector<4x16x32xf32> to vector<4x16x32xbf16>
    "tpu.trace_start"() <{level = 10 : i32, message = "hqd,hkd->hqk"}> : () -> ()
    %cst_30 = arith.constant dense<0.000000e+00> : vector<4x16x16xf32>
    %77 = tpu.matmul %56, %66, %cst_30 {dimension_numbers = #tpu.dot_dimension_numbers<[2], [2], [1], [1], [0, 0, 0, 1, 1, 1], [0], [0]>} : vector<4x16x32xbf16>, vector<4x16x32xbf16>, vector<4x16x16xf32> -> vector<4x16x16xf32>
    "tpu.trace_stop"() : () -> ()
    %78 = vector.broadcast %27 : vector<1x16x16xf32> to vector<4x16x16xf32>
    %79 = arith.addf %77, %78 : vector<4x16x16xf32>
    %cst_31 = arith.constant dense<0xFF800000> : vector<4x16xf32>
    %80 = vector.multi_reduction <maximumf>, %79, %cst_31 [2] : vector<4x16x16xf32> to vector<4x16xf32>
    %81 = vector.shape_cast %80 : vector<4x16xf32> to vector<4x16x1xf32>
    %82 = vector.broadcast %81 : vector<4x16x1xf32> to vector<4x16x16xf32>
    %83 = arith.subf %79, %82 : vector<4x16x16xf32>
    %84 = math.exp %83 : vector<4x16x16xf32>
    %cst_32 = arith.constant dense<0.000000e+00> : vector<4x16xf32>
    %85 = vector.multi_reduction <add>, %84, %cst_32 [2] : vector<4x16x16xf32> to vector<4x16xf32>
    %86 = vector.shape_cast %85 : vector<4x16xf32> to vector<4x16x1xf32>
    %87 = tpu.reciprocal %86 {approx = true} : vector<4x16x1xf32> -> vector<4x16x1xf32>
    %88 = vector.broadcast %87 : vector<4x16x1xf32> to vector<4x16x16xf32>
    %89 = arith.mulf %84, %88 : vector<4x16x16xf32>
    %90 = arith.truncf %89 : vector<4x16x16xf32> to vector<4x16x16xbf16>
    "tpu.trace_start"() <{level = 10 : i32, message = "hqk,hkd->hqd"}> : () -> ()
    %cst_33 = arith.constant dense<0.000000e+00> : vector<4x16x32xf32>
    %91 = tpu.matmul %90, %76, %cst_33 {dimension_numbers = #tpu.dot_dimension_numbers<[2], [1], [1], [2], [0, 0, 0, 1, 1, 2], [0], [0]>} : vector<4x16x16xbf16>, vector<4x16x32xbf16>, vector<4x16x32xf32> -> vector<4x16x32xf32>
    "tpu.trace_stop"() : () -> ()
    %92 = vector.extract_strided_slice %91 {offsets = [0, 0, 0], sizes = [1, 16, 32], strides = [1, 1, 1]} : vector<4x16x32xf32> to vector<1x16x32xf32>
    %93 = vector.shape_cast %92 : vector<1x16x32xf32> to vector<16x32xf32>
    %94 = vector.extract_strided_slice %91 {offsets = [1, 0, 0], sizes = [1, 16, 32], strides = [1, 1, 1]} : vector<4x16x32xf32> to vector<1x16x32xf32>
    %95 = vector.shape_cast %94 : vector<1x16x32xf32> to vector<16x32xf32>
    %96 = vector.extract_strided_slice %91 {offsets = [2, 0, 0], sizes = [1, 16, 32], strides = [1, 1, 1]} : vector<4x16x32xf32> to vector<1x16x32xf32>
    %97 = vector.shape_cast %96 : vector<1x16x32xf32> to vector<16x32xf32>
    %98 = vector.extract_strided_slice %91 {offsets = [3, 0, 0], sizes = [1, 16, 32], strides = [1, 1, 1]} : vector<4x16x32xf32> to vector<1x16x32xf32>
    %99 = vector.shape_cast %98 : vector<1x16x32xf32> to vector<16x32xf32>
    %100 = tpu.concatenate %93, %95, %97, %99 in 1 : vector<16x32xf32>, vector<16x32xf32>, vector<16x32xf32>, vector<16x32xf32> -> vector<16x128xf32>
    %101 = arith.truncf %100 : vector<16x128xf32> to vector<16x128xbf16>
    %c0_34 = arith.constant 0 : index
    %c0_35 = arith.constant 0 : index
    %c384 = arith.constant 384 : index
    %102 = vector.load %arg5[%c0_34, %c0_35, %c384] : memref<2x128x768xbf16, #tpu.memory_space<vmem>>, vector<1x128x128xbf16>
    %103 = vector.shape_cast %102 : vector<1x128x128xbf16> to vector<128x128xbf16>
    %cst_36 = arith.constant dense<0.000000e+00> : vector<16x128xf32>
    %104 = tpu.matmul %101, %103, %cst_36 {dimension_numbers = #tpu.dot_dimension_numbers<[1], [0], [0], [1], [0, 0, 1, 1], [], []>} : vector<16x128xbf16>, vector<128x128xbf16>, vector<16x128xf32> -> vector<16x128xf32>
    %c0_37 = arith.constant 0 : index
    %c3 = arith.constant 3 : index
    %c0_38 = arith.constant 0 : index
    %105 = vector.load %arg6[%c0_37, %c3, %c0_38] : memref<2x8x128xf32, #tpu.memory_space<vmem>>, vector<1x1x128xf32>
    %106 = vector.shape_cast %105 : vector<1x1x128xf32> to vector<1x128xf32>
    %107 = vector.broadcast %106 : vector<1x128xf32> to vector<16x128xf32>
    %108 = arith.addf %104, %107 : vector<16x128xf32>
    %109 = arith.truncf %108 : vector<16x128xf32> to vector<16x128xbf16>
    %c0_39 = arith.constant 0 : index
    %c0_40 = arith.constant 0 : index
    %c512 = arith.constant 512 : index
    %110 = vector.load %arg5[%c0_39, %c0_40, %c512] : memref<2x128x768xbf16, #tpu.memory_space<vmem>>, vector<1x128x128xbf16>
    %111 = vector.shape_cast %110 : vector<1x128x128xbf16> to vector<128x128xbf16>
    %cst_41 = arith.constant dense<0.000000e+00> : vector<16x128xf32>
    %112 = tpu.matmul %109, %111, %cst_41 {dimension_numbers = #tpu.dot_dimension_numbers<[1], [0], [0], [1], [0, 0, 1, 1], [], []>} : vector<16x128xbf16>, vector<128x128xbf16>, vector<16x128xf32> -> vector<16x128xf32>
    %c0_42 = arith.constant 0 : index
    %c4 = arith.constant 4 : index
    %c0_43 = arith.constant 0 : index
    %113 = vector.load %arg6[%c0_42, %c4, %c0_43] : memref<2x8x128xf32, #tpu.memory_space<vmem>>, vector<1x1x128xf32>
    %114 = vector.shape_cast %113 : vector<1x1x128xf32> to vector<1x128xf32>
    %115 = vector.broadcast %114 : vector<1x128xf32> to vector<16x128xf32>
    %116 = arith.addf %112, %115 : vector<16x128xf32>
    %cst_44 = arith.constant 0.000000e+00 : f32
    %117 = vector.broadcast %cst_44 : f32 to vector<16x128xf32>
    %118 = arith.cmpf ogt, %116, %117 : vector<16x128xf32>
    %119 = math.exp %116 : vector<16x128xf32>
    %cst_45 = arith.constant 1.000000e+00 : f32
    %120 = vector.broadcast %cst_45 : f32 to vector<16x128xf32>
    %121 = arith.subf %119, %120 : vector<16x128xf32>
    %122 = arith.select %118, %116, %121 : vector<16x128xi1>, vector<16x128xf32>
    %123 = arith.truncf %122 : vector<16x128xf32> to vector<16x128xbf16>
    %c0_46 = arith.constant 0 : index
    %c0_47 = arith.constant 0 : index
    %c640 = arith.constant 640 : index
    %124 = vector.load %arg5[%c0_46, %c0_47, %c640] : memref<2x128x768xbf16, #tpu.memory_space<vmem>>, vector<1x128x128xbf16>
    %125 = vector.shape_cast %124 : vector<1x128x128xbf16> to vector<128x128xbf16>
    %cst_48 = arith.constant dense<0.000000e+00> : vector<16x128xf32>
    %126 = tpu.matmul %123, %125, %cst_48 {dimension_numbers = #tpu.dot_dimension_numbers<[1], [0], [0], [1], [0, 0, 1, 1], [], []>} : vector<16x128xbf16>, vector<128x128xbf16>, vector<16x128xf32> -> vector<16x128xf32>
    %c0_49 = arith.constant 0 : index
    %c5 = arith.constant 5 : index
    %c0_50 = arith.constant 0 : index
    %127 = vector.load %arg6[%c0_49, %c5, %c0_50] : memref<2x8x128xf32, #tpu.memory_space<vmem>>, vector<1x1x128xf32>
    %128 = vector.shape_cast %127 : vector<1x1x128xf32> to vector<1x128xf32>
    %129 = vector.broadcast %128 : vector<1x128xf32> to vector<16x128xf32>
    %130 = arith.addf %126, %129 : vector<16x128xf32>
    %131 = arith.addf %130, %25 : vector<16x128xf32>
    %cst_51 = arith.constant dense<0.000000e+00> : vector<16xf32>
    %132 = vector.multi_reduction <add>, %131, %cst_51 [1] : vector<16x128xf32> to vector<16xf32>
    %133 = vector.shape_cast %132 : vector<16xf32> to vector<16x1xf32>
    %cst_52 = arith.constant 1.280000e+02 : f32
    %134 = vector.broadcast %cst_52 : f32 to vector<16x1xf32>
    %135 = arith.divf %133, %134 : vector<16x1xf32>
    %136 = arith.mulf %131, %131 : vector<16x128xf32>
    %cst_53 = arith.constant dense<0.000000e+00> : vector<16xf32>
    %137 = vector.multi_reduction <add>, %136, %cst_53 [1] : vector<16x128xf32> to vector<16xf32>
    %138 = vector.shape_cast %137 : vector<16xf32> to vector<16x1xf32>
    %cst_54 = arith.constant 1.280000e+02 : f32
    %139 = vector.broadcast %cst_54 : f32 to vector<16x1xf32>
    %140 = arith.divf %138, %139 : vector<16x1xf32>
    %141 = arith.mulf %135, %135 : vector<16x1xf32>
    %142 = arith.subf %140, %141 : vector<16x1xf32>
    %143 = vector.broadcast %135 : vector<16x1xf32> to vector<16x128xf32>
    %144 = arith.subf %131, %143 : vector<16x128xf32>
    %cst_55 = arith.constant 9.99999974E-6 : f32
    %145 = vector.broadcast %cst_55 : f32 to vector<16x1xf32>
    %146 = arith.addf %142, %145 : vector<16x1xf32>
    %147 = math.rsqrt %146 : vector<16x1xf32>
    %148 = vector.broadcast %147 : vector<16x1xf32> to vector<16x128xf32>
    %149 = arith.mulf %144, %148 : vector<16x128xf32>
    %c0_56 = arith.constant 0 : index
    %c6 = arith.constant 6 : index
    %c0_57 = arith.constant 0 : index
    %150 = vector.load %arg6[%c0_56, %c6, %c0_57] : memref<2x8x128xf32, #tpu.memory_space<vmem>>, vector<1x1x128xf32>
    %151 = vector.shape_cast %150 : vector<1x1x128xf32> to vector<1x128xf32>
    %152 = vector.broadcast %151 : vector<1x128xf32> to vector<16x128xf32>
    %153 = arith.mulf %149, %152 : vector<16x128xf32>
    %c0_58 = arith.constant 0 : index
    %c7 = arith.constant 7 : index
    %c0_59 = arith.constant 0 : index
    %154 = vector.load %arg6[%c0_58, %c7, %c0_59] : memref<2x8x128xf32, #tpu.memory_space<vmem>>, vector<1x1x128xf32>
    %155 = vector.shape_cast %154 : vector<1x1x128xf32> to vector<1x128xf32>
    %156 = vector.broadcast %155 : vector<1x128xf32> to vector<16x128xf32>
    %157 = arith.addf %153, %156 : vector<16x128xf32>
    %158 = arith.truncf %157 : vector<16x128xf32> to vector<16x128xbf16>
    %c1_60 = arith.constant 1 : index
    %c0_61 = arith.constant 0 : index
    %c0_62 = arith.constant 0 : index
    %159 = vector.load %arg5[%c1_60, %c0_61, %c0_62] : memref<2x128x768xbf16, #tpu.memory_space<vmem>>, vector<1x128x384xbf16>
    %160 = vector.shape_cast %159 : vector<1x128x384xbf16> to vector<128x384xbf16>
    %cst_63 = arith.constant dense<0.000000e+00> : vector<16x384xf32>
    %161 = tpu.matmul %158, %160, %cst_63 {dimension_numbers = #tpu.dot_dimension_numbers<[1], [0], [0], [1], [0, 0, 1, 1], [], []>} : vector<16x128xbf16>, vector<128x384xbf16>, vector<16x384xf32> -> vector<16x384xf32>
    %162 = vector.extract_strided_slice %161 {offsets = [0, 0], sizes = [16, 128], strides = [1, 1]} : vector<16x384xf32> to vector<16x128xf32>
    %c1_64 = arith.constant 1 : index
    %c0_65 = arith.constant 0 : index
    %c0_66 = arith.constant 0 : index
    %163 = vector.load %arg6[%c1_64, %c0_65, %c0_66] : memref<2x8x128xf32, #tpu.memory_space<vmem>>, vector<1x1x128xf32>
    %164 = vector.shape_cast %163 : vector<1x1x128xf32> to vector<1x128xf32>
    %165 = vector.broadcast %164 : vector<1x128xf32> to vector<16x128xf32>
    %166 = arith.addf %162, %165 : vector<16x128xf32>
    %167 = vector.extract_strided_slice %161 {offsets = [0, 128], sizes = [16, 128], strides = [1, 1]} : vector<16x384xf32> to vector<16x128xf32>
    %c1_67 = arith.constant 1 : index
    %c1_68 = arith.constant 1 : index
    %c0_69 = arith.constant 0 : index
    %168 = vector.load %arg6[%c1_67, %c1_68, %c0_69] : memref<2x8x128xf32, #tpu.memory_space<vmem>>, vector<1x1x128xf32>
    %169 = vector.shape_cast %168 : vector<1x1x128xf32> to vector<1x128xf32>
    %170 = vector.broadcast %169 : vector<1x128xf32> to vector<16x128xf32>
    %171 = arith.addf %167, %170 : vector<16x128xf32>
    %172 = vector.extract_strided_slice %161 {offsets = [0, 256], sizes = [16, 128], strides = [1, 1]} : vector<16x384xf32> to vector<16x128xf32>
    %c1_70 = arith.constant 1 : index
    %c2_71 = arith.constant 2 : index
    %c0_72 = arith.constant 0 : index
    %173 = vector.load %arg6[%c1_70, %c2_71, %c0_72] : memref<2x8x128xf32, #tpu.memory_space<vmem>>, vector<1x1x128xf32>
    %174 = vector.shape_cast %173 : vector<1x1x128xf32> to vector<1x128xf32>
    %175 = vector.broadcast %174 : vector<1x128xf32> to vector<16x128xf32>
    %176 = arith.addf %172, %175 : vector<16x128xf32>
    %177 = vector.extract_strided_slice %166 {offsets = [0, 0], sizes = [16, 32], strides = [1, 1]} : vector<16x128xf32> to vector<16x32xf32>
    %178 = vector.extract_strided_slice %166 {offsets = [0, 32], sizes = [16, 32], strides = [1, 1]} : vector<16x128xf32> to vector<16x32xf32>
    %179 = vector.extract_strided_slice %166 {offsets = [0, 64], sizes = [16, 32], strides = [1, 1]} : vector<16x128xf32> to vector<16x32xf32>
    %180 = vector.extract_strided_slice %166 {offsets = [0, 96], sizes = [16, 32], strides = [1, 1]} : vector<16x128xf32> to vector<16x32xf32>
    %181 = vector.shape_cast %177 : vector<16x32xf32> to vector<1x16x32xf32>
    %182 = vector.shape_cast %178 : vector<16x32xf32> to vector<1x16x32xf32>
    %183 = vector.shape_cast %179 : vector<16x32xf32> to vector<1x16x32xf32>
    %184 = vector.shape_cast %180 : vector<16x32xf32> to vector<1x16x32xf32>
    %185 = tpu.concatenate %181, %182, %183, %184 in 0 : vector<1x16x32xf32>, vector<1x16x32xf32>, vector<1x16x32xf32>, vector<1x16x32xf32> -> vector<4x16x32xf32>
    %186 = arith.truncf %185 : vector<4x16x32xf32> to vector<4x16x32xbf16>
    %187 = vector.extract_strided_slice %171 {offsets = [0, 0], sizes = [16, 32], strides = [1, 1]} : vector<16x128xf32> to vector<16x32xf32>
    %188 = vector.extract_strided_slice %171 {offsets = [0, 32], sizes = [16, 32], strides = [1, 1]} : vector<16x128xf32> to vector<16x32xf32>
    %189 = vector.extract_strided_slice %171 {offsets = [0, 64], sizes = [16, 32], strides = [1, 1]} : vector<16x128xf32> to vector<16x32xf32>
    %190 = vector.extract_strided_slice %171 {offsets = [0, 96], sizes = [16, 32], strides = [1, 1]} : vector<16x128xf32> to vector<16x32xf32>
    %191 = vector.shape_cast %187 : vector<16x32xf32> to vector<1x16x32xf32>
    %192 = vector.shape_cast %188 : vector<16x32xf32> to vector<1x16x32xf32>
    %193 = vector.shape_cast %189 : vector<16x32xf32> to vector<1x16x32xf32>
    %194 = vector.shape_cast %190 : vector<16x32xf32> to vector<1x16x32xf32>
    %195 = tpu.concatenate %191, %192, %193, %194 in 0 : vector<1x16x32xf32>, vector<1x16x32xf32>, vector<1x16x32xf32>, vector<1x16x32xf32> -> vector<4x16x32xf32>
    %196 = arith.truncf %195 : vector<4x16x32xf32> to vector<4x16x32xbf16>
    %197 = vector.extract_strided_slice %176 {offsets = [0, 0], sizes = [16, 32], strides = [1, 1]} : vector<16x128xf32> to vector<16x32xf32>
    %198 = vector.extract_strided_slice %176 {offsets = [0, 32], sizes = [16, 32], strides = [1, 1]} : vector<16x128xf32> to vector<16x32xf32>
    %199 = vector.extract_strided_slice %176 {offsets = [0, 64], sizes = [16, 32], strides = [1, 1]} : vector<16x128xf32> to vector<16x32xf32>
    %200 = vector.extract_strided_slice %176 {offsets = [0, 96], sizes = [16, 32], strides = [1, 1]} : vector<16x128xf32> to vector<16x32xf32>
    %201 = vector.shape_cast %197 : vector<16x32xf32> to vector<1x16x32xf32>
    %202 = vector.shape_cast %198 : vector<16x32xf32> to vector<1x16x32xf32>
    %203 = vector.shape_cast %199 : vector<16x32xf32> to vector<1x16x32xf32>
    %204 = vector.shape_cast %200 : vector<16x32xf32> to vector<1x16x32xf32>
    %205 = tpu.concatenate %201, %202, %203, %204 in 0 : vector<1x16x32xf32>, vector<1x16x32xf32>, vector<1x16x32xf32>, vector<1x16x32xf32> -> vector<4x16x32xf32>
    %206 = arith.truncf %205 : vector<4x16x32xf32> to vector<4x16x32xbf16>
    "tpu.trace_start"() <{level = 10 : i32, message = "hqd,hkd->hqk"}> : () -> ()
    %cst_73 = arith.constant dense<0.000000e+00> : vector<4x16x16xf32>
    %207 = tpu.matmul %186, %196, %cst_73 {dimension_numbers = #tpu.dot_dimension_numbers<[2], [2], [1], [1], [0, 0, 0, 1, 1, 1], [0], [0]>} : vector<4x16x32xbf16>, vector<4x16x32xbf16>, vector<4x16x16xf32> -> vector<4x16x16xf32>
    "tpu.trace_stop"() : () -> ()
    %208 = vector.broadcast %27 : vector<1x16x16xf32> to vector<4x16x16xf32>
    %209 = arith.addf %207, %208 : vector<4x16x16xf32>
    %cst_74 = arith.constant dense<0xFF800000> : vector<4x16xf32>
    %210 = vector.multi_reduction <maximumf>, %209, %cst_74 [2] : vector<4x16x16xf32> to vector<4x16xf32>
    %211 = vector.shape_cast %210 : vector<4x16xf32> to vector<4x16x1xf32>
    %212 = vector.broadcast %211 : vector<4x16x1xf32> to vector<4x16x16xf32>
    %213 = arith.subf %209, %212 : vector<4x16x16xf32>
    %214 = math.exp %213 : vector<4x16x16xf32>
    %cst_75 = arith.constant dense<0.000000e+00> : vector<4x16xf32>
    %215 = vector.multi_reduction <add>, %214, %cst_75 [2] : vector<4x16x16xf32> to vector<4x16xf32>
    %216 = vector.shape_cast %215 : vector<4x16xf32> to vector<4x16x1xf32>
    %217 = tpu.reciprocal %216 {approx = true} : vector<4x16x1xf32> -> vector<4x16x1xf32>
    %218 = vector.broadcast %217 : vector<4x16x1xf32> to vector<4x16x16xf32>
    %219 = arith.mulf %214, %218 : vector<4x16x16xf32>
    %220 = arith.truncf %219 : vector<4x16x16xf32> to vector<4x16x16xbf16>
    "tpu.trace_start"() <{level = 10 : i32, message = "hqk,hkd->hqd"}> : () -> ()
    %cst_76 = arith.constant dense<0.000000e+00> : vector<4x16x32xf32>
    %221 = tpu.matmul %220, %206, %cst_76 {dimension_numbers = #tpu.dot_dimension_numbers<[2], [1], [1], [2], [0, 0, 0, 1, 1, 2], [0], [0]>} : vector<4x16x16xbf16>, vector<4x16x32xbf16>, vector<4x16x32xf32> -> vector<4x16x32xf32>
    "tpu.trace_stop"() : () -> ()
    %222 = vector.extract_strided_slice %221 {offsets = [0, 0, 0], sizes = [1, 16, 32], strides = [1, 1, 1]} : vector<4x16x32xf32> to vector<1x16x32xf32>
    %223 = vector.shape_cast %222 : vector<1x16x32xf32> to vector<16x32xf32>
    %224 = vector.extract_strided_slice %221 {offsets = [1, 0, 0], sizes = [1, 16, 32], strides = [1, 1, 1]} : vector<4x16x32xf32> to vector<1x16x32xf32>
    %225 = vector.shape_cast %224 : vector<1x16x32xf32> to vector<16x32xf32>
    %226 = vector.extract_strided_slice %221 {offsets = [2, 0, 0], sizes = [1, 16, 32], strides = [1, 1, 1]} : vector<4x16x32xf32> to vector<1x16x32xf32>
    %227 = vector.shape_cast %226 : vector<1x16x32xf32> to vector<16x32xf32>
    %228 = vector.extract_strided_slice %221 {offsets = [3, 0, 0], sizes = [1, 16, 32], strides = [1, 1, 1]} : vector<4x16x32xf32> to vector<1x16x32xf32>
    %229 = vector.shape_cast %228 : vector<1x16x32xf32> to vector<16x32xf32>
    %230 = tpu.concatenate %223, %225, %227, %229 in 1 : vector<16x32xf32>, vector<16x32xf32>, vector<16x32xf32>, vector<16x32xf32> -> vector<16x128xf32>
    %231 = arith.truncf %230 : vector<16x128xf32> to vector<16x128xbf16>
    %c1_77 = arith.constant 1 : index
    %c0_78 = arith.constant 0 : index
    %c384_79 = arith.constant 384 : index
    %232 = vector.load %arg5[%c1_77, %c0_78, %c384_79] : memref<2x128x768xbf16, #tpu.memory_space<vmem>>, vector<1x128x128xbf16>
    %233 = vector.shape_cast %232 : vector<1x128x128xbf16> to vector<128x128xbf16>
    %cst_80 = arith.constant dense<0.000000e+00> : vector<16x128xf32>
    %234 = tpu.matmul %231, %233, %cst_80 {dimension_numbers = #tpu.dot_dimension_numbers<[1], [0], [0], [1], [0, 0, 1, 1], [], []>} : vector<16x128xbf16>, vector<128x128xbf16>, vector<16x128xf32> -> vector<16x128xf32>
    %c1_81 = arith.constant 1 : index
    %c3_82 = arith.constant 3 : index
    %c0_83 = arith.constant 0 : index
    %235 = vector.load %arg6[%c1_81, %c3_82, %c0_83] : memref<2x8x128xf32, #tpu.memory_space<vmem>>, vector<1x1x128xf32>
    %236 = vector.shape_cast %235 : vector<1x1x128xf32> to vector<1x128xf32>
    %237 = vector.broadcast %236 : vector<1x128xf32> to vector<16x128xf32>
    %238 = arith.addf %234, %237 : vector<16x128xf32>
    %239 = arith.truncf %238 : vector<16x128xf32> to vector<16x128xbf16>
    %c1_84 = arith.constant 1 : index
    %c0_85 = arith.constant 0 : index
    %c512_86 = arith.constant 512 : index
    %240 = vector.load %arg5[%c1_84, %c0_85, %c512_86] : memref<2x128x768xbf16, #tpu.memory_space<vmem>>, vector<1x128x128xbf16>
    %241 = vector.shape_cast %240 : vector<1x128x128xbf16> to vector<128x128xbf16>
    %cst_87 = arith.constant dense<0.000000e+00> : vector<16x128xf32>
    %242 = tpu.matmul %239, %241, %cst_87 {dimension_numbers = #tpu.dot_dimension_numbers<[1], [0], [0], [1], [0, 0, 1, 1], [], []>} : vector<16x128xbf16>, vector<128x128xbf16>, vector<16x128xf32> -> vector<16x128xf32>
    %c1_88 = arith.constant 1 : index
    %c4_89 = arith.constant 4 : index
    %c0_90 = arith.constant 0 : index
    %243 = vector.load %arg6[%c1_88, %c4_89, %c0_90] : memref<2x8x128xf32, #tpu.memory_space<vmem>>, vector<1x1x128xf32>
    %244 = vector.shape_cast %243 : vector<1x1x128xf32> to vector<1x128xf32>
    %245 = vector.broadcast %244 : vector<1x128xf32> to vector<16x128xf32>
    %246 = arith.addf %242, %245 : vector<16x128xf32>
    %cst_91 = arith.constant 0.000000e+00 : f32
    %247 = vector.broadcast %cst_91 : f32 to vector<16x128xf32>
    %248 = arith.cmpf ogt, %246, %247 : vector<16x128xf32>
    %249 = math.exp %246 : vector<16x128xf32>
    %cst_92 = arith.constant 1.000000e+00 : f32
    %250 = vector.broadcast %cst_92 : f32 to vector<16x128xf32>
    %251 = arith.subf %249, %250 : vector<16x128xf32>
    %252 = arith.select %248, %246, %251 : vector<16x128xi1>, vector<16x128xf32>
    %253 = arith.truncf %252 : vector<16x128xf32> to vector<16x128xbf16>
    %c1_93 = arith.constant 1 : index
    %c0_94 = arith.constant 0 : index
    %c640_95 = arith.constant 640 : index
    %254 = vector.load %arg5[%c1_93, %c0_94, %c640_95] : memref<2x128x768xbf16, #tpu.memory_space<vmem>>, vector<1x128x128xbf16>
    %255 = vector.shape_cast %254 : vector<1x128x128xbf16> to vector<128x128xbf16>
    %cst_96 = arith.constant dense<0.000000e+00> : vector<16x128xf32>
    %256 = tpu.matmul %253, %255, %cst_96 {dimension_numbers = #tpu.dot_dimension_numbers<[1], [0], [0], [1], [0, 0, 1, 1], [], []>} : vector<16x128xbf16>, vector<128x128xbf16>, vector<16x128xf32> -> vector<16x128xf32>
    %c1_97 = arith.constant 1 : index
    %c5_98 = arith.constant 5 : index
    %c0_99 = arith.constant 0 : index
    %257 = vector.load %arg6[%c1_97, %c5_98, %c0_99] : memref<2x8x128xf32, #tpu.memory_space<vmem>>, vector<1x1x128xf32>
    %258 = vector.shape_cast %257 : vector<1x1x128xf32> to vector<1x128xf32>
    %259 = vector.broadcast %258 : vector<1x128xf32> to vector<16x128xf32>
    %260 = arith.addf %256, %259 : vector<16x128xf32>
    %261 = arith.addf %260, %157 : vector<16x128xf32>
    %cst_100 = arith.constant dense<0.000000e+00> : vector<16xf32>
    %262 = vector.multi_reduction <add>, %261, %cst_100 [1] : vector<16x128xf32> to vector<16xf32>
    %263 = vector.shape_cast %262 : vector<16xf32> to vector<16x1xf32>
    %cst_101 = arith.constant 1.280000e+02 : f32
    %264 = vector.broadcast %cst_101 : f32 to vector<16x1xf32>
    %265 = arith.divf %263, %264 : vector<16x1xf32>
    %266 = arith.mulf %261, %261 : vector<16x128xf32>
    %cst_102 = arith.constant dense<0.000000e+00> : vector<16xf32>
    %267 = vector.multi_reduction <add>, %266, %cst_102 [1] : vector<16x128xf32> to vector<16xf32>
    %268 = vector.shape_cast %267 : vector<16xf32> to vector<16x1xf32>
    %cst_103 = arith.constant 1.280000e+02 : f32
    %269 = vector.broadcast %cst_103 : f32 to vector<16x1xf32>
    %270 = arith.divf %268, %269 : vector<16x1xf32>
    %271 = arith.mulf %265, %265 : vector<16x1xf32>
    %272 = arith.subf %270, %271 : vector<16x1xf32>
    %273 = vector.broadcast %265 : vector<16x1xf32> to vector<16x128xf32>
    %274 = arith.subf %261, %273 : vector<16x128xf32>
    %cst_104 = arith.constant 9.99999974E-6 : f32
    %275 = vector.broadcast %cst_104 : f32 to vector<16x1xf32>
    %276 = arith.addf %272, %275 : vector<16x1xf32>
    %277 = math.rsqrt %276 : vector<16x1xf32>
    %278 = vector.broadcast %277 : vector<16x1xf32> to vector<16x128xf32>
    %279 = arith.mulf %274, %278 : vector<16x128xf32>
    %c1_105 = arith.constant 1 : index
    %c6_106 = arith.constant 6 : index
    %c0_107 = arith.constant 0 : index
    %280 = vector.load %arg6[%c1_105, %c6_106, %c0_107] : memref<2x8x128xf32, #tpu.memory_space<vmem>>, vector<1x1x128xf32>
    %281 = vector.shape_cast %280 : vector<1x1x128xf32> to vector<1x128xf32>
    %282 = vector.broadcast %281 : vector<1x128xf32> to vector<16x128xf32>
    %283 = arith.mulf %279, %282 : vector<16x128xf32>
    %c1_108 = arith.constant 1 : index
    %c7_109 = arith.constant 7 : index
    %c0_110 = arith.constant 0 : index
    %284 = vector.load %arg6[%c1_108, %c7_109, %c0_110] : memref<2x8x128xf32, #tpu.memory_space<vmem>>, vector<1x1x128xf32>
    %285 = vector.shape_cast %284 : vector<1x1x128xf32> to vector<1x128xf32>
    %286 = vector.broadcast %285 : vector<1x128xf32> to vector<16x128xf32>
    %287 = arith.addf %283, %286 : vector<16x128xf32>
    %288 = arith.truncf %287 : vector<16x128xf32> to vector<16x128xbf16>
    %c0_111 = arith.constant 0 : index
    %c0_112 = arith.constant 0 : index
    %289 = vector.load %arg8[%c0_111, %c0_112] : memref<128x128xbf16, #tpu.memory_space<vmem>>, vector<128x128xbf16>
    %cst_113 = arith.constant dense<0.000000e+00> : vector<16x128xf32>
    %290 = tpu.matmul %288, %289, %cst_113 {dimension_numbers = #tpu.dot_dimension_numbers<[1], [0], [0], [1], [0, 0, 1, 1], [], []>} : vector<16x128xbf16>, vector<128x128xbf16>, vector<16x128xf32> -> vector<16x128xf32>
    %c0_114 = arith.constant 0 : index
    %c0_115 = arith.constant 0 : index
    %c0_116 = arith.constant 0 : index
    %291 = vector.load %arg9[%c0_114, %c0_115, %c0_116] : memref<1x16x128xf32, #tpu.memory_space<vmem>>, vector<1x16x128xf32>
    %292 = vector.shape_cast %291 : vector<1x16x128xf32> to vector<16x128xf32>
    %293 = vector.shape_cast %290 : vector<16x128xf32> to vector<1x16x128xf32>
    tpu.vector_store %arg9[%c0_114, %c0_115, %c0_116], %293 {strides = array<i32>} : memref<1x16x128xf32, #tpu.memory_space<vmem>>, vector<1x16x128xf32>,
    return
  }
  func.func @transform_0(%arg0: i32) -> (i32, i32, i32) {
    %c0_i32 = arith.constant 0 : i32
    %c0_i32_0 = arith.constant 0 : i32
    %c0_i32_1 = arith.constant 0 : i32
    return %arg0, %c0_i32, %c0_i32_0 : i32, i32, i32
  }
  func.func @transform_1(%arg0: i32) -> (i32, i32) {
    %c0_i32 = arith.constant 0 : i32
    %c0_i32_0 = arith.constant 0 : i32
    %c0_i32_1 = arith.constant 0 : i32
    return %c0_i32, %c0_i32_0 : i32, i32
  }
  func.func @transform_2(%arg0: i32) -> (i32, i32, i32) {
    %c0_i32 = arith.constant 0 : i32
    %c0_i32_0 = arith.constant 0 : i32
    %c0_i32_1 = arith.constant 0 : i32
    %c0_i32_2 = arith.constant 0 : i32
    return %c0_i32, %c0_i32_0, %c0_i32_1 : i32, i32, i32
  }
  func.func @transform_3(%arg0: i32) -> (i32, i32) {
    %c0_i32 = arith.constant 0 : i32
    %c0_i32_0 = arith.constant 0 : i32
    %c0_i32_1 = arith.constant 0 : i32
    return %c0_i32, %c0_i32_0 : i32, i32
  }
  func.func @transform_4(%arg0: i32) -> (i32, i32, i32) {
    %c0_i32 = arith.constant 0 : i32
    %c0_i32_0 = arith.constant 0 : i32
    %c0_i32_1 = arith.constant 0 : i32
    %c0_i32_2 = arith.constant 0 : i32
    return %c0_i32, %c0_i32_0, %c0_i32_1 : i32, i32, i32
  }
  func.func @transform_5(%arg0: i32) -> (i32, i32, i32) {
    %c0_i32 = arith.constant 0 : i32
    %c0_i32_0 = arith.constant 0 : i32
    %c0_i32_1 = arith.constant 0 : i32
    %c0_i32_2 = arith.constant 0 : i32
    return %c0_i32, %c0_i32_0, %c0_i32_1 : i32, i32, i32
  }
  func.func @transform_6(%arg0: i32) -> (i32, i32) {
    %c0_i32 = arith.constant 0 : i32
    %c0_i32_0 = arith.constant 0 : i32
    %c0_i32_1 = arith.constant 0 : i32
    return %c0_i32, %c0_i32_0 : i32, i32
  }
  func.func @transform_7(%arg0: i32) -> (i32, i32) {
    %c0_i32 = arith.constant 0 : i32
    %c0_i32_0 = arith.constant 0 : i32
    %c0_i32_1 = arith.constant 0 : i32
    return %c0_i32, %c0_i32_0 : i32, i32
  }
  func.func @transform_8(%arg0: i32) -> (i32, i32, i32) {
    %c0_i32 = arith.constant 0 : i32
    %c0_i32_0 = arith.constant 0 : i32
    %c0_i32_1 = arith.constant 0 : i32
    return %arg0, %c0_i32, %c0_i32_0 : i32, i32, i32
  }
}

</mosaic_0001>

<bundles_post_ra>
// kernel: squeeze.1
= control target key start
LH: loop header
LB: loop body
LE: loop exit
PB: predicated region body
PF: predicated region fallthrough
CT: control target
= control target key end

     0   :  { %s95_s0 = inlined_call_operand.vmem [shape: f32[2,3,1,3], index: 0, kind: input, shape index: {}]   ;;  %s96_s1 = inlined_call_operand.hbm [shape: f32[6,3], index: 1, kind: output, shape index: {}]  }
   0x1   :  { %v45_v0 = vld [vmem:[%s95_s0 + $0x4] sm:$0x3]  ;;  %v46_v1 = vld [vmem:[%s95_s0 + $0x2] sm:$0x3]  ;;  %v15_v2 = vld [vmem:[%s95_s0] sm:$0x3] }
   0x2   :  { %10 = vst [vmem:[#allocation3 + $0x10] sm:$0x3] %v45_v0  ;;  %14 = vst [vmem:[#allocation3 + $0x8] sm:$0x3] %v46_v1 }
   0x3   :  { %16 = vst [vmem:[#allocation3] sm:$0x3] %v15_v2 }
   0x4   :  { %2 = vsyncpa [#allocation1], 0  ;;  %vm18_vm0 = vcmask 23552   ;;  %s71_s0 = smov 3   ;;  %vm24_vm1 = vcmask 48152   ;;  %s72_s12 = smov [#allocation0]  }
   0x5   :  { %s38_s13 = sshll.u32 %s72_s12, 4  ;;  %s39_s13 = int_to_ptr.vmem [resolvable:$true] %s38_s13 }
   0x6   :  { %s49_s14 = scalar_lea.vmem %s39_s13, 64  ;;  %p54_p1 = scmp.lt.s32.totalorder %s39_s13, %s39_s13 }
   0x7   :  { %p50_p0 = scmp.ne.s32.totalorder %s39_s13, %s49_s14  ;;  %p55_p2 = scmp.lt.s32.totalorder %s49_s14, %s49_s14 }
   0x9   :  { %p56_p3 = por %p55_p2, %p54_p1 }
   0xa   :  { %v21_v3 = vld [vmem:[#allocation3 + $0x1] ss:$8 sm:$0x7]   ;;  %v17_v4 = vld [vmem:[#allocation3] ss:$8 sm:$0x7]  }
   0xb   :  { %22 = vrot.lane.b32.xlu0 %v21_v3, %s71_s0  ;;  %19 = vst.msk [vmem:[#allocation2] sm:$0x7] %vm18_vm0, %v17_v4   ;;  %p57_p4 = pnand %p56_p3, %p50_p0 }
  0x7d   :  { %v23_v5 = vpop.permute.xlu0 %22  }
  0x7e   :  { %25 = vst.msk [vmem:[#allocation2] sm:$0x7] %vm24_vm1, %v23_v5  }
  0x85   :  { %v30_v6 = vld [vmem:[#allocation2] sm:$0xf] }
  0x86   :  { %33 = vst [vmem:[#allocation0] sm:$0xf] %v30_v6 }
  0x87   :  { %60 = shalt.err (!%p57_p4)
}
  0x88   :  { %41 = dma.vmem_to_hbm [thread:$0]  %s39_s13, 64, %s96_s1, [#allocation1]  }
  0x89   :  { %69 = dma.done.wait [#allocation1], 64  }
  0x8a   :  { %70 = vsyncadd [#allocation1], 4294967232 }
  0x8b   :  { %43 = vsyncpa [#allocation1], 1 }

// kernel: _lambda_.1
= control target key start
LH: loop header
LB: loop body
LE: loop exit
PB: predicated region body
PF: predicated region fallthrough
CT: control target
= control target key end

     0   :  { %v4448_v20 = vmov 0   ;;  %vm515_vm0 = vcmask 523264   ;;  %v4449_v23 = vmov 0.0   ;;  %vm4450_vm1 = vmmov 0   ;;  %s4451_s28 = smov 64   ;;  %s4452_s29 = smov 96   ;;  %s5442_s2 = inlined_call_operand.vmem [shape: bf16[2,128,128], index: 2, kind: input, shape index: {}]   ;;  %s5443_s0 = inlined_call_operand.vmem [shape: bf16[1,192,128], index: 0, kind: input, shape index: {}]   ;;  %s5444_s1 = inlined_call_operand.vmem [shape: bf16[16,192], index: 1, kind: input, shape index: {}]   ;;  %s5445_s3 = inlined_call_operand.vmem [shape: f32[18,128], index: 3, kind: input, shape index: {}]   ;;  %s5446_s4 = inlined_call_operand.vmem [shape: bf16[2,128,768], index: 4, kind: input, shape index: {}]   ;;  %s5447_s5 = inlined_call_operand.vmem [shape: f32[2,8,128], index: 5, kind: input, shape index: {}]   ;;  %s5448_s6 = inlined_call_operand.vmem [shape: f32[16,16], index: 6, kind: input, shape index: {}]   ;;  %s5449_s7 = inlined_call_operand.vmem [shape: bf16[128,128], index: 7, kind: input, shape index: {}]   ;;  %s5450_s8 = inlined_call_operand.vmem [shape: f32[1,16,128], index: 8, kind: output, shape index: {}]  }
   0x1   :  { %v4119_v0 = vld [vmem:[%s5442_s2 + $0x38] sm:$0xff]   ;;  %v4120_v1 = vld [vmem:[%s5442_s2 + $0x30] sm:$0xff]   ;;  %v4121_v2 = vld [vmem:[%s5442_s2 + $0x28] sm:$0xff]   ;;  %519 = vmatprep.subr.bf16.mxu1 %v4448_v20  ;;  %vm1016_vm2 = vcmask 261120   ;;  %s4453_s30 = smov 32   ;;  %vm1205_vm3 = vcmask 130048  }
   0x2   :  { %3657 = vmatprep.subr.bf16.mxu0 %v4119_v0  ;;  %v4122_v3 = vld [vmem:[%s5442_s2 + $0x20] sm:$0xff]   ;;  %v4123_v5 = vld [vmem:[%s5442_s2 + $0x18] sm:$0xff]   ;;  %v4124_v6 = vld [vmem:[%s5442_s2 + $0x10] sm:$0xff]   ;;  %vm1502_vm4 = vcmask 785408  }
   0x3   :  { %3658 = vmatpush3.bf16.msra.mxu0 %v4119_v0  ;;  %v4127_v4 = vld [vmem:[%s5443_s0] sm:$0xff]   ;;  %v4125_v7 = vld [vmem:[%s5442_s2 + $0x8] sm:$0xff]   ;;  %v4129_v10 = vld [vmem:[%s5443_s0 + $0x10] sm:$0xff]  }
   0x4   :  { %3659 = vmatprep.subr.bf16.mxu0 %v4120_v1  ;;  %3673 = vmatprep.mubr.bf16.mxu0 %v4127_v4  ;;  %v4126_v8 = vld [vmem:[%s5442_s2] sm:$0xff]   ;;  %v4128_v9 = vld [vmem:[%s5443_s0 + $0x8] sm:$0xff]   ;;  %v4130_v11 = vld [vmem:[%s5443_s0 + $0x18] sm:$0xff]  }
   0x5   :  { %v4131_v12 = vld [vmem:[%s5443_s0 + $0x20] sm:$0xff]   ;;  %v4132_v13 = vld [vmem:[%s5443_s0 + $0x28] sm:$0xff]   ;;  %v4133_v14 = vld [vmem:[%s5443_s0 + $0x30] sm:$0xff]  }
   0x6   :  { %v4134_v15 = vld [vmem:[%s5443_s0 + $0x38] sm:$0xff]   ;;  %v4135_v16 = vld [vmem:[%s5443_s0 + $0x40] sm:$0xff]   ;;  %v4136_v17 = vld [vmem:[%s5443_s0 + $0x48] sm:$0xff]  }
   0x7   :  { %3660 = vmatpush3.bf16.msra.mxu0 %v4120_v1  ;;  %v4137_v18 = vld [vmem:[%s5443_s0 + $0x50] sm:$0xff]   ;;  %v4138_v19 = vld [vmem:[%s5443_s0 + $0x58] sm:$0xff]   ;;  %v4141_v21 = vld [vmem:[%s5444_s1 + $0x4] ss:$8 sps:$4 sm:$0xff]  }
   0x8   :  { %3661 = vmatprep.subr.bf16.mxu0 %v4121_v2  ;;  %3261 = vmatprep.mubr.msk.bf16.mxu1 %vm515_vm0, %v4141_v21  ;;  %v4142_v22 = vld [vmem:[%s5442_s2 + $0x78] sm:$0xff]   ;;  %v4143_v24 = vld [vmem:[%s5442_s2 + $0x70] sm:$0xff]   ;;  %v4144_v25 = vld [vmem:[%s5442_s2 + $0x68] sm:$0xff]  }
   0x9   :  { %v4145_v26 = vld [vmem:[%s5442_s2 + $0x60] sm:$0xff]   ;;  %v4146_v28 = vld [vmem:[%s5442_s2 + $0x58] sm:$0xff]   ;;  %v4147_v31 = vld [vmem:[%s5442_s2 + $0x50] sm:$0xff]  }
   0xa   :  { %v4148_v34 = vld [vmem:[%s5442_s2 + $0x48] sm:$0xff]   ;;  %v4600_v42 = vld [vmem:[%s5445_s3 + $0x10] ss:$0 sm:$0xff] }
   0xb   :  { %3662 = vmatpush3.bf16.msra.mxu0 %v4121_v2 }
   0xc   :  { %3663 = vmatprep.subr.bf16.mxu0 %v4122_v3 }
   0xf   :  { %3664 = vmatpush3.bf16.msra.mxu0 %v4122_v3 }
  0x10   :  { %3665 = vmatprep.subr.bf16.mxu0 %v4123_v5 }
  0x13   :  { %3666 = vmatpush3.bf16.msra.mxu0 %v4123_v5 }
  0x14   :  { %3667 = vmatprep.subr.bf16.mxu0 %v4124_v6 }
  0x17   :  { %3668 = vmatpush3.bf16.msra.mxu0 %v4124_v6 }
  0x18   :  { %3669 = vmatprep.subr.bf16.mxu0 %v4125_v7 }
  0x1b   :  { %3670 = vmatpush3.bf16.msra.mxu0 %v4125_v7 }
  0x1c   :  { %3671 = vmatprep.subr.bf16.mxu0 %v4126_v8 }
  0x1f   :  { %3672 = vmatpush3.bf16.msra.mxu0 %v4126_v8 }
  0x20   :  { %3697 = vmatprep.subr.bf16.mxu0 %v4449_v23 }
  0x22   :  { %3674 = vmatmul.mubr.bf16.vlgmr.msra.gmra.mxu0 %v4128_v9 }
  0x23   :  { %3677 = vmatprep.mubr.bf16.mxu0 %v4129_v10  ;;  %3698 = vmatpush3.bf16.msra.mxu0 %v4142_v22 }
  0x24   :  { %3699 = vmatprep.subr.bf16.mxu0 %v4449_v23 }
  0x27   :  { %3700 = vmatpush3.bf16.msra.mxu0 %v4143_v24 }
  0x28   :  { %3701 = vmatprep.subr.bf16.mxu0 %v4449_v23 }
  0x2a   :  { %3678 = vmatmul.mubr.bf16.gmra.mxu0 %v4130_v11 }
  0x2b   :  { %3681 = vmatprep.mubr.bf16.mxu0 %v4131_v12  ;;  %3702 = vmatpush3.bf16.msra.mxu0 %v4144_v25 }
  0x2c   :  { %3703 = vmatprep.subr.bf16.mxu0 %v4449_v23 }
  0x2f   :  { %3704 = vmatpush3.bf16.msra.mxu0 %v4145_v26 }
  0x30   :  { %3705 = vmatprep.subr.bf16.mxu0 %v4449_v23 }
  0x32   :  { %3682 = vmatmul.mubr.bf16.gmra.mxu0 %v4132_v13 }
  0x33   :  { %3685 = vmatprep.mubr.bf16.mxu0 %v4133_v14  ;;  %3706 = vmatpush3.bf16.msra.mxu0 %v4146_v28 }
  0x34   :  { %3707 = vmatprep.subr.bf16.mxu0 %v4449_v23 }
  0x37   :  { %3708 = vmatpush3.bf16.msra.mxu0 %v4147_v31 }
  0x38   :  { %3709 = vmatprep.subr.bf16.mxu0 %v4449_v23 }
  0x3a   :  { %3686 = vmatmul.mubr.bf16.gmra.mxu0 %v4134_v15 }
  0x3b   :  { %3689 = vmatprep.mubr.bf16.mxu0 %v4135_v16  ;;  %3710 = vmatpush3.bf16.msra.mxu0 %v4148_v34 }
  0x3c   :  { %3711 = vmatprep.subr.bf16.mxu0 %v4449_v23 }
  0x42   :  { %3690 = vmatmul.mubr.bf16.gmra.mxu0 %v4136_v17 }
  0x43   :  { %3693 = vmatprep.mubr.bf16.mxu0 %v4137_v18 }
  0x4a   :  { %3694 = vmatmul.mubr.bf16.gmra.mxu0 %v4138_v19 }
  0x4b   :  { %3713 = vmatprep.mubr.msk.bf16.mxu0 %vm4450_vm1, %v4449_v23 }
  0xe2   :  { %v3675_v27 = vpop.f32.mrf.mxu0 }
  0xe3   :  { %v4651_v6 = vadd.f32 %v3675_v27, %v4600_v42 }
  0xe4   :  { %v4583_v29 = vpop.f32.mrf.mxu0 }
  0xe5   :  { %v3237_v13 = vmul.f32 -1.442695, %v4651_v6  ;;  %v4672_v25 = vadd.f32 %v4600_v42, %v4583_v29 }
  0xe6   :  { %v3676_v30 = vpop.f32.mrf.mxu0 }
  0xe7   :  { %v4660_v11 = vadd.f32 %v3676_v30, %v4600_v42  ;;  %v3235_v29 = vmul.f32 -1.442695, %v4672_v25 }
  0xe8   :  { %v4589_v32 = vpop.f32.mrf.mxu0 }
  0xe9   :  { %v3238_v19 = vmul.f32 -1.442695, %v4660_v11  ;;  %v4668_v21 = vadd.f32 %v4600_v42, %v4589_v32 }
  0xea   :  { %v3679_v33 = vpop.f32.mrf.mxu0 }
  0xeb   :  { %v4641_v1 = vadd.f32 %v3679_v33, %v4600_v42  ;;  %v3236_v33 = vmul.f32 -1.442695, %v4668_v21 }
  0xec   :  { %v245_v35 = vpop.f32.mrf.mxu0 }
  0xed   :  { %v3241_v8 = vmul.f32 -1.442695, %v4641_v1  ;;  %v4657_v9 = vadd.f32 %v4600_v42, %v245_v35 }
  0xee   :  { %v3680_v36 = vpop.f32.mrf.mxu0 }
  0xef   :  { %v4634_v61 = vadd.f32 %v3680_v36, %v4600_v42  ;;  %v3239_v15 = vmul.f32 -1.442695, %v4657_v9 }
  0xf0   :  { %v248_v37 = vpop.f32.mrf.mxu0 }
  0xf1   :  { %v3242_v4 = vmul.f32 -1.442695, %v4634_v61  ;;  %v4648_v5 = vadd.f32 %v4600_v42, %v248_v37 }
  0xf2   :  { %v3683_v38 = vpop.f32.mrf.mxu0 }
  0xf3   :  { %v4609_v47 = vadd.f32 %v3683_v38, %v4600_v42  ;;  %v3240_v12 = vmul.f32 -1.442695, %v4648_v5 }
  0xf4   :  { %v261_v39 = vpop.f32.mrf.mxu0 }
  0xf5   :  { %v3245_v56 = vmul.f32 -1.442695, %v4609_v47  ;;  %v4625_v57 = vadd.f32 %v4600_v42, %v261_v39 }
  0xf6   :  { %v3684_v40 = vpop.f32.mrf.mxu0 }
  0xf7   :  { %v4603_v44 = vadd.f32 %v3684_v40, %v4600_v42  ;;  %v3243_v2 = vmul.f32 -1.442695, %v4625_v57 }
  0xf8   :  { %v264_v41 = vpop.f32.mrf.mxu0 }
  0xf9   :  { %v3246_v51 = vmul.f32 -1.442695, %v4603_v44  ;;  %v4617_v52 = vadd.f32 %v4600_v42, %v264_v41 }
  0xfa   :  { %v3687_v43 = vpop.f32.mrf.mxu0 }
  0xfb   :  { %v4606_v45 = vadd.f32 %v3687_v43, %v4600_v42  ;;  %v3244_v62 = vmul.f32 -1.442695, %v4617_v52 }
  0xfc   :  { %v277_v46 = vpop.f32.mrf.mxu0 }
  0xfd   :  { %v3249_v48 = vmul.f32 -1.442695, %v4606_v45  ;;  %v4613_v49 = vadd.f32 %v4600_v42, %v277_v46 }
  0xfe   :  { %v3688_v50 = vpop.f32.mrf.mxu0 }
  0xff   :  { %v3247_v53 = vmul.f32 -1.442695, %v4613_v49  ;;  %v4621_v54 = vadd.f32 %v3688_v50, %v4600_v42  ;;  %4270 = vpow2.f32 %v3249_v48 }
 0x100   :  { %v280_v55 = vpop.f32.mrf.mxu0 }
 0x101   :  { %v3250_v58 = vmul.f32 -1.442695, %v4621_v54  ;;  %v4629_v59 = vadd.f32 %v4600_v42, %v280_v55  ;;  %4272 = vpow2.f32 %v3247_v53 }
 0x102   :  { %v4631_v60 = vpop.f32.mrf.mxu0  ;;  %4274 = vpow2.f32 %v3246_v51 }
 0x103   :  { %v3248_v63 = vmul.f32 -1.442695, %v4629_v59  ;;  %4276 = vpow2.f32 %v3250_v58 }
 0x104   :  { %v4638_v0 = vpop.f32.mrf.mxu0  ;;  %4278 = vpow2.f32 %v3245_v56 }
 0x105   :  { %4280 = vpow2.f32 %v3248_v63 }
 0x106   :  { %v4644_v3 = vpop.f32.mrf.mxu0  ;;  %4282 = vpow2.f32 %v3244_v62 }
 0x107   :  { %4284 = vpow2.f32 %v3243_v2  ;;  %v4692_v62 = vadd.f32 %v4644_v3, %v4600_v42 }
 0x108   :  { %v4653_v7 = vpop.f32.mrf.mxu0  ;;  %4286 = vpow2.f32 %v3242_v4 }
 0x109   :  { %4288 = vpow2.f32 %v3241_v8  ;;  %v4697_v8 = vadd.f32 %v4631_v60, %v4600_v42  ;;  %v3254_v3 = vmul.f32 -1.442695, %v4692_v62 }
 0x10a   :  { %v3695_v10 = vpop.f32.mrf.mxu0  ;;  %4290 = vpow2.f32 %v3240_v12 }
 0x10b   :  { %4292 = vpow2.f32 %v3237_v13  ;;  %v4680_v40 = vadd.f32 %v3695_v10, %v4600_v42  ;;  %v3253_v60 = vmul.f32 -1.442695, %v4697_v8 }
 0x10c   :  { %v4271_v14 = vpop.eup %4270  ;;  %v309_v16 = vpop.f32.mrf.mxu0  ;;  %4294 = vpow2.f32 %v3239_v15 }
 0x10d   :  { %v410_v17 = vadd.f32 1.0, %v4271_v14  ;;  %v3257_v53 = vmul.f32 -1.442695, %v4680_v40  ;;  %v4688_v55 = vadd.f32 %v4600_v42, %v309_v16  ;;  %v4703_v16 = vadd.f32 %v4600_v42, %v4653_v7 }
 0x10e   :  { %v4273_v18 = vpop.eup %4272  ;;  %v3696_v27 = vpop.f32.mrf.mxu0 }
 0x10f   :  { %v4275_v22 = vpop.eup %4274  ;;  %v408_v26 = vadd.f32 1.0, %v4273_v18  ;;  %4296 = vrcp.f32 %v410_v17  ;;  %v4676_v36 = vadd.f32 %v3696_v27, %v4600_v42  ;;  %v3255_v12 = vmul.f32 -1.442695, %v4688_v55 }
 0x110   :  { %v4277_v24 = vpop.eup %4276  ;;  %4298 = vpow2.f32 %v3238_v19  ;;  %v407_v34 = vadd.f32 1.0, %v4275_v22  ;;  %v312_v37 = vpop.f32.mrf.mxu0 }
 0x111   :  { %v4279_v28 = vpop.eup %4278  ;;  %v411_v30 = vadd.f32 1.0, %v4277_v24  ;;  %v3258_v46 = vmul.f32 -1.442695, %v4676_v36  ;;  %v4684_v48 = vadd.f32 %v4600_v42, %v312_v37 }
 0x112   :  { %v4281_v31 = vpop.eup %4280  ;;  %v406_v39 = vadd.f32 1.0, %v4279_v28 }
 0x113   :  { %v4283_v32 = vpop.eup %4282  ;;  %4300 = vrcp.f32 %v411_v30  ;;  %v409_v35 = vadd.f32 1.0, %v4281_v31  ;;  %v3256_v63 = vmul.f32 -1.442695, %v4684_v48  ;;  %v3252_v31 = vmul.f32 -1.442695, %v4703_v16 }
 0x114   :  { %4302 = vrcp.f32 %v408_v26  ;;  %v4285_v38 = vpop.eup %4284  ;;  %v405_v41 = vadd.f32 1.0, %v4283_v32  ;;  %v4710_v26 = vadd.f32 %v4600_v42, %v4638_v0 }
 0x115   :  { %4304 = vrcp.f32 %v409_v35  ;;  %v4287_v43 = vpop.eup %4286  ;;  %v404_v50 = vadd.f32 1.0, %v4285_v38 }
 0x116   :  { %4306 = vpow2.f32 %v3236_v33  ;;  %v4289_v51 = vpop.eup %4288  ;;  %v403_v56 = vadd.f32 1.0, %v4287_v43  ;;  %v3251_v42 = vmul.f32 -1.442695, %v4710_v26 }
 0x117   :  { %4308 = vrcp.f32 %v407_v34  ;;  %v4291_v58 = vpop.eup %4290  ;;  %v402_v4 = vadd.f32 1.0, %v4289_v51 }
 0x118   :  { %4310 = vpow2.f32 %v3235_v29  ;;  %v4293_v2 = vpop.eup %4292  ;;  %v401_v14 = vadd.f32 1.0, %v4291_v58 }
 0x119   :  { %4312 = vrcp.f32 %v406_v39  ;;  %v4295_v10 = vpop.eup %4294  ;;  %v398_v34 = vadd.f32 1.0, %v4293_v2 }
 0x11a   :  { %4314 = vrcp.f32 %v405_v41  ;;  %v400_v18 = vadd.f32 1.0, %v4295_v10 }
 0x11b   :  { %4316 = vpow2.f32 %v3258_v46 }
 0x11c   :  { %4318 = vrcp.f32 %v404_v50  ;;  %v4297_v13 = vpop.eup %4296 }
 0x11d   :  { %4320 = vpow2.f32 %v3257_v53  ;;  %v4299_v15 = vpop.eup %4298  ;;  %v482_v22 = vmul.f32 %v4297_v13, %v4606_v45 }
 0x11e   :  { %4322 = vrcp.f32 %v403_v56  ;;  %v399_v28 = vadd.f32 1.0, %v4299_v15 }
 0x11f   :  { %4324 = vpow2.f32 %v3256_v63 }
 0x120   :  { %v4301_v17 = vpop.eup %4300  ;;  %4326 = vrcp.f32 %v402_v4 }
 0x121   :  { %v4303_v19 = vpop.eup %4302  ;;  %v483_v24 = vmul.f32 %v4301_v17, %v4621_v54  ;;  %4328 = vpow2.f32 %v3255_v12 }
 0x122   :  { %v4305_v27 = vpop.eup %4304  ;;  %4330 = vrcp.f32 %v401_v14  ;;  %v480_v54 = vmul.f32 %v4303_v19, %v4613_v49 }
 0x123   :  { %v4307_v7 = vpop.eup %4306  ;;  %v481_v30 = vmul.f32 %v4305_v27, %v4629_v59  ;;  %4332 = vpow2.f32 %v3254_v3  ;;  %v501_v33 = vpack.c.bf16 %v483_v24, %v482_v22 }
 0x124   :  { %v4309_v32 = vpop.eup %4308  ;;  %4334 = vrcp.f32 %v400_v18  ;;  %v397_v59 = vadd.f32 1.0, %v4307_v7 }
 0x125   :  { %v4311_v45 = vpop.eup %4310  ;;  %4336 = vpow2.f32 %v3253_v60  ;;  %520 = vmatpush1.bf16.msra.mxu1 %v501_v33  ;;  %v479_v29 = vmul.f32 %v4309_v32, %v4603_v44  ;;  %v500_v37 = vpack.c.bf16 %v481_v30, %v480_v54 }
 0x126   :  { %v4313_v0 = vpop.eup %4312  ;;  %4338 = vrcp.f32 %v399_v28  ;;  %521 = vmatprep.subr.bf16.mxu1 %v4448_v20  ;;  %v396_v41 = vadd.f32 1.0, %v4311_v45 }
 0x127   :  { %v4315_v35 = vpop.eup %4314  ;;  %4340 = vpow2.f32 %v3252_v31  ;;  %v478_v49 = vmul.f32 %v4313_v0, %v4609_v47 }
 0x128   :  { %v4317_v38 = vpop.eup %4316  ;;  %4342 = vrcp.f32 %v398_v34  ;;  %v477_v50 = vmul.f32 %v4315_v35, %v4617_v52 }
 0x129   :  { %v4319_v39 = vpop.eup %4318  ;;  %4344 = vpow2.f32 %v3251_v42  ;;  %522 = vmatpush1.bf16.msra.mxu1 %v500_v37  ;;  %v419_v51 = vadd.f32 1.0, %v4317_v38  ;;  %v499_v53 = vpack.c.bf16 %v479_v29, %v478_v49 }
 0x12a   :  { %v4321_v43 = vpop.eup %4320  ;;  %523 = vmatprep.subr.bf16.mxu1 %v4448_v20  ;;  %4346 = vrcp.f32 %v397_v59  ;;  %v476_v58 = vmul.f32 %v4319_v39, %v4625_v57 }
 0x12b   :  { %v4323_v46 = vpop.eup %4322  ;;  %4348 = vrcp.f32 %v396_v41  ;;  %v418_v63 = vadd.f32 1.0, %v4321_v43 }
 0x12c   :  { %v4325_v44 = vpop.eup %4324  ;;  %v475_v4 = vmul.f32 %v4323_v46, %v4634_v61  ;;  %4350 = vrcp.f32 %v419_v51  ;;  %v498_v12 = vpack.c.bf16 %v477_v50, %v476_v58  ;;  %v4156_v46 = vld [vmem:[%s5446_s4 + $0x124] ss:$24 sps:$4 sm:$0xff]   ;;  %v4154_v50 = vld [vmem:[%s5446_s4 + $0x120] ss:$24 sps:$4 sm:$0xff]   ;;  %v4160_v51 = vld [vmem:[%s5446_s4 + $0xf4] ss:$24 sps:$4 sm:$0xff]  }
 0x12d   :  { %v4327_v56 = vpop.eup %4326  ;;  %524 = vmatpush1.bf16.msra.mxu1 %v499_v53  ;;  %v417_v10 = vadd.f32 1.0, %v4325_v44  ;;  %4352 = vrcp.f32 %v418_v63  ;;  %v4158_v53 = vld [vmem:[%s5446_s4 + $0xf0] ss:$24 sps:$4 sm:$0xff]   ;;  %v4164_v44 = vld [vmem:[%s5446_s4 + $0xc4] ss:$24 sps:$4 sm:$0xff]  }
 0x12e   :  { %v4329_v2 = vpop.eup %4328  ;;  %525 = vmatprep.subr.bf16.mxu1 %v4448_v20  ;;  %v474_v14 = vmul.f32 %v4327_v56, %v4641_v1  ;;  %v4162_v56 = vld [vmem:[%s5446_s4 + $0xc0] ss:$24 sps:$4 sm:$0xff]   ;;  %v4168_v58 = vld [vmem:[%s5446_s4 + $0x94] ss:$24 sps:$4 sm:$0xff]   ;;  %v4166_v63 = vld [vmem:[%s5446_s4 + $0x90] ss:$24 sps:$4 sm:$0xff]  }
 0x12f   :  { %v4331_v47 = vpop.eup %4330  ;;  %v416_v15 = vadd.f32 1.0, %v4329_v2  ;;  %4354 = vrcp.f32 %v417_v10  ;;  %v4172_v2 = vld [vmem:[%s5446_s4 + $0x64] ss:$24 sps:$4 sm:$0xff]  }
 0x130   :  { %v4333_v13 = vpop.eup %4332  ;;  %v473_v17 = vmul.f32 %v4331_v47, %v4648_v5  ;;  %v497_v60 = vpack.c.bf16 %v475_v4, %v474_v14  ;;  %v4170_v47 = vld [vmem:[%s5446_s4 + $0x60] ss:$24 sps:$4 sm:$0xff]  }
 0x131   :  { %v4335_v52 = vpop.eup %4334  ;;  %526 = vmatpush1.bf16.msra.mxu1 %v498_v12  ;;  %v415_v18 = vadd.f32 1.0, %v4333_v13  ;;  %4356 = vrcp.f32 %v416_v15  ;;  %v4153_v13 = vld [vmem:[%s5446_s4 + $0x158] ss:$24 sps:$4 sm:$0xff]   ;;  %v4157_v15 = vld [vmem:[%s5446_s4 + $0x128] ss:$24 sps:$4 sm:$0xff]  }
 0x132   :  { %v4337_v3 = vpop.eup %4336  ;;  %527 = vmatprep.subr.bf16.mxu1 %v4448_v20  ;;  %v472_v22 = vmul.f32 %v4335_v52, %v4657_v9 }
 0x133   :  { %v4339_v57 = vpop.eup %4338  ;;  %v414_v24 = vadd.f32 1.0, %v4337_v3  ;;  %4358 = vrcp.f32 %v415_v18  ;;  %v4161_v3 = vld [vmem:[%s5446_s4 + $0xf8] ss:$24 sps:$4 sm:$0xff]   ;;  %v4173_v18 = vld [vmem:[%s5446_s4 + $0x68] ss:$24 sps:$4 sm:$0xff]  }
 0x134   :  { %v4341_v61 = vpop.eup %4340  ;;  %v471_v27 = vmul.f32 %v4339_v57, %v4660_v11  ;;  %v496_v7 = vpack.c.bf16 %v473_v17, %v472_v22  ;;  %v4165_v57 = vld [vmem:[%s5446_s4 + $0xc8] ss:$24 sps:$4 sm:$0xff]   ;;  %v4169_v17 = vld [vmem:[%s5446_s4 + $0x98] ss:$24 sps:$4 sm:$0xff]   ;;  %v4180_v22 = vld [vmem:[%s5446_s4 + $0x4] ss:$24 sps:$4 sm:$0xff]  }
 0x135   :  { %v4343_v19 = vpop.eup %4342  ;;  %528 = vmatpush1.bf16.msra.mxu1 %v497_v60  ;;  %v413_v28 = vadd.f32 1.0, %v4341_v61  ;;  %4360 = vrcp.f32 %v414_v24  ;;  %v4176_v60 = vld [vmem:[%s5446_s4 + $0x34] ss:$24 sps:$4 sm:$0xff]   ;;  %v4174_v61 = vld [vmem:[%s5446_s4 + $0x30] ss:$24 sps:$4 sm:$0xff]  }
 0x136   :  { %v4345_v1 = vpop.eup %4344  ;;  %529 = vmatprep.subr.bf16.mxu1 %v4448_v20  ;;  %v470_v5 = vmul.f32 %v4343_v19, %v4651_v6  ;;  %v4177_v19 = vld [vmem:[%s5446_s4 + $0x38] ss:$24 sps:$4 sm:$0xff]  }
 0x137   :  { %v4347_v30 = vpop.eup %4346  ;;  %v412_v31 = vadd.f32 1.0, %v4345_v1  ;;  %4362 = vrcp.f32 %v413_v28  ;;  %v4178_v24 = vld [vmem:[%s5446_s4] ss:$24 sps:$4 sm:$0xff]  }
 0x138   :  { %v4349_v33 = vpop.eup %4348  ;;  %v469_v9 = vmul.f32 %v4347_v30, %v4668_v21  ;;  %v495_v32 = vpack.c.bf16 %v471_v27, %v470_v5  ;;  %v4181_v1 = vld [vmem:[%s5446_s4 + $0x8] ss:$24 sps:$4 sm:$0xff]   ;;  %v3278_v27 = vld [vmem:[%s5445_s3 + $0x11] ss:$0 sm:$0xff] }
 0x139   :  { %530 = vmatpush1.bf16.msra.mxu1 %v496_v7  ;;  %v4351_v34 = vpop.eup %4350  ;;  %v468_v45 = vmul.f32 %v4349_v33, %v4672_v25  ;;  %4364 = vrcp.f32 %v412_v31  ;;  %v672_v5 = vld [vmem:[%s5445_s3] sm:$0xff]  ;;  %v673_v33 = vld [vmem:[%s5445_s3 + $0x8] sm:$0xff] }
 0x13a   :  { %531 = vmatprep.subr.bf16.mxu1 %v4448_v20  ;;  %v4353_v11 = vpop.eup %4352  ;;  %v491_v6 = vmul.f32 %v4351_v34, %v4676_v36 }
 0x13b   :  { %v494_v54 = vpack.c.bf16 %v469_v9, %v468_v45  ;;  %v490_v0 = vmul.f32 %v4353_v11, %v4680_v40 }
 0x13c   :  { %v4355_v42 = vpop.eup %4354 }
 0x13d   :  { %532 = vmatpush1.bf16.msra.mxu1 %v495_v32  ;;  %v489_v21 = vmul.f32 %v4355_v42, %v4684_v48  ;;  %v505_v59 = vpack.c.bf16 %v491_v6, %v490_v0  ;;  %v3313_v42 = vld [vmem:[%s5447_s5 + $0x2] ss:$0 sm:$0xff] }
 0x13e   :  { %533 = vmatprep.subr.bf16.mxu1 %v4448_v20  ;;  %v4357_v35 = vpop.eup %4356 }
 0x13f   :  { %v488_v25 = vmul.f32 %v4357_v35, %v4688_v55 }
 0x140   :  { %v4359_v29 = vpop.eup %4358 }
 0x141   :  { %534 = vmatpush1.bf16.msra.mxu1 %v494_v54  ;;  %v487_v36 = vmul.f32 %v4359_v29, %v4692_v62  ;;  %v504_v38 = vpack.c.bf16 %v489_v21, %v488_v25  ;;  %v4139_v62 = vld [vmem:[%s5444_s1] ss:$8 sps:$4 sm:$0xff]  }
 0x142   :  { %543 = vmatprep.subr.bf16.mxu1 %v4448_v20  ;;  %v4361_v37 = vpop.eup %4360  ;;  %v3312_v21 = vld [vmem:[%s5447_s5 + $0x1] ss:$0 sm:$0xff] }
 0x143   :  { %v486_v40 = vmul.f32 %v4361_v37, %v4697_v8  ;;  %v4149_v8 = vld [vmem:[%s5442_s2 + $0x40] sm:$0xff]  }
 0x144   :  { %v4363_v39 = vpop.eup %4362  ;;  %3712 = vmatpush3.bf16.msra.mxu0 %v4149_v8 }
 0x145   :  { %544 = vmatpush2.bf16.msra.mxu1 %v505_v59  ;;  %v485_v48 = vmul.f32 %v4363_v39, %v4703_v16  ;;  %v503_v49 = vpack.c.bf16 %v487_v36, %v486_v40  ;;  %3717 = vmatprep.subr.bf16.mxu0 %v4449_v23  ;;  %v4150_v16 = vld [vmem:[%s5446_s4 + $0x150] ss:$24 sps:$4 sm:$0xff]  }
 0x146   :  { %545 = vmatprep.subr.bf16.mxu1 %v4448_v20  ;;  %v4365_v41 = vpop.eup %4364 }
 0x147   :  { %v484_v43 = vmul.f32 %v4365_v41, %v4710_v26  ;;  %v4152_v26 = vld [vmem:[%s5446_s4 + $0x154] ss:$24 sps:$4 sm:$0xff]  }
 0x149   :  { %546 = vmatpush2.bf16.msra.mxu1 %v504_v38  ;;  %v502_v55 = vpack.c.bf16 %v485_v48, %v484_v43  ;;  %v3311_v48 = vld [vmem:[%s5447_s5] ss:$0 sm:$0xff] }
 0x14a   :  { %547 = vmatprep.subr.bf16.mxu1 %v4448_v20 }
 0x14d   :  { %548 = vmatpush2.bf16.msra.mxu1 %v503_v49 }
 0x14e   :  { %549 = vmatprep.subr.bf16.mxu1 %v4448_v20 }
 0x151   :  { %550 = vmatpush2.bf16.msra.mxu1 %v502_v55 }
 0x152   :  { %839 = vmatprep.subr.bf16.mxu1 %v4152_v26 }
 0x154   :  { %552 = vmatmul.mubr.bf16.vlgmr.msra.gmra.mxu1 %v4139_v62 }
 0x155   :  { %871 = vmatprep.mubr.bf16.mxu1 %v4448_v20  ;;  %840 = vmatpush1.bf16.msra.mxu1 %v4150_v16 }
 0x156   :  { %841 = vmatprep.subr.bf16.mxu1 %v4156_v46 }
 0x159   :  { %842 = vmatpush1.bf16.msra.mxu1 %v4154_v50 }
 0x15a   :  { %843 = vmatprep.subr.bf16.mxu1 %v4160_v51 }
 0x15d   :  { %844 = vmatpush1.bf16.msra.mxu1 %v4158_v53 }
 0x15e   :  { %845 = vmatprep.subr.bf16.mxu1 %v4164_v44 }
 0x161   :  { %846 = vmatpush1.bf16.msra.mxu1 %v4162_v56 }
 0x162   :  { %847 = vmatprep.subr.bf16.mxu1 %v4168_v58 }
 0x165   :  { %848 = vmatpush1.bf16.msra.mxu1 %v4166_v63 }
 0x166   :  { %849 = vmatprep.subr.bf16.mxu1 %v4172_v2 }
 0x169   :  { %850 = vmatpush1.bf16.msra.mxu1 %v4170_v47 }
 0x16a   :  { %851 = vmatprep.subr.bf16.mxu1 %v4176_v60 }
 0x16d   :  { %852 = vmatpush1.bf16.msra.mxu1 %v4174_v61 }
 0x16e   :  { %853 = vmatprep.subr.bf16.mxu1 %v4180_v22 }
 0x171   :  { %854 = vmatpush1.bf16.msra.mxu1 %v4178_v24 }
 0x172   :  { %3737 = vmatprep.subr.bf16.mxu1 %v4449_v23 }
 0x214   :  { %v553_v4 = vpop.f32.mrf.mxu1 }
 0x216   :  { %v555_v10 = vpop.f32.mrf.mxu1 }
 0x218   :  { %v556_v12 = vpop.f32.mrf.mxu1 }
 0x219   :  { %v560_v52 = vpack.c.bf16 %v556_v12, %v553_v4 }
 0x21a   :  { %v558_v14 = vpop.f32.mrf.mxu1 }
 0x21b   :  { %3714 = vmatmul.mubr.bf16.vlgmr.msra.gmra.mxu0 %v560_v52 }
 0x21c   :  { %3718 = vmatpush3.bf16.msra.mxu0 %v4153_v13  ;;  %3733 = vmatprep.mubr.msk.bf16.mxu0 %vm4450_vm1, %v4449_v23 }
 0x21d   :  { %3719 = vmatprep.subr.bf16.mxu0 %v4449_v23 }
 0x220   :  { %3720 = vmatpush3.bf16.msra.mxu0 %v4157_v15 }
 0x221   :  { %3721 = vmatprep.subr.bf16.mxu0 %v4449_v23 }
 0x224   :  { %3722 = vmatpush3.bf16.msra.mxu0 %v4161_v3 }
 0x225   :  { %3723 = vmatprep.subr.bf16.mxu0 %v4449_v23 }
 0x228   :  { %3724 = vmatpush3.bf16.msra.mxu0 %v4165_v57 }
 0x229   :  { %3725 = vmatprep.subr.bf16.mxu0 %v4449_v23 }
 0x22c   :  { %3726 = vmatpush3.bf16.msra.mxu0 %v4169_v17 }
 0x22d   :  { %3727 = vmatprep.subr.bf16.mxu0 %v4449_v23 }
 0x230   :  { %3728 = vmatpush3.bf16.msra.mxu0 %v4173_v18 }
 0x231   :  { %3729 = vmatprep.subr.bf16.mxu0 %v4449_v23 }
 0x234   :  { %3730 = vmatpush3.bf16.msra.mxu0 %v4177_v19 }
 0x235   :  { %3731 = vmatprep.subr.bf16.mxu0 %v4449_v23 }
 0x238   :  { %3732 = vmatpush3.bf16.msra.mxu0 %v4181_v1 }
 0x239   :  { %3761 = vmatprep.subr.bf16.mxu0 %v4449_v23 }
 0x2db   :  { %v665_v28 = vpop.f32.mrf.mxu0 }
 0x2dc   :  { %v666_v30 = vadd.f32 %v3278_v27, %v665_v28  ;;  %v4900_v28 = vld [vmem:[%s5448_s6] sm:$0xff] }
 0x2dd   :  { %v3715_v7 = vpop.f32.mrf.mxu0 }
 0x2de   :  { %v4849_v34 = vadd.f32 %v672_v5, %v666_v30 }
 0x2df   :  { %v668_v31 = vpop.f32.mrf.mxu0 }
 0x2e0   :  { %v669_v9 = vadd.f32 %v3278_v27, %v668_v31  ;;  %v4906_v31 = vld [vmem:[%s5448_s6 + $0x8] sm:$0xff] }
 0x2e1   :  { %v3716_v32 = vpop.f32.mrf.mxu0 }
 0x2e2   :  { %v4851_v45 = vadd.f32 %v673_v33, %v669_v9 }
 0x2e4   :  { %v678_v11 = vpack.c.bf16 %v4851_v45, %v4849_v34 }
 0x2e6   :  { %872 = vmatmul.mubr.bf16.vlgmr.msra.gmra.mxu1 %v678_v11  ;;  %3734 = vmatmul.mubr.bf16.vlgmr.msra.gmra.mxu0 %v678_v11 }
 0x2e7   :  { %3739 = vmatprep.mubr.msk.bf16.mxu1 %vm4450_vm1, %v4449_v23  ;;  %3763 = vmatprep.mubr.msk.bf16.mxu0 %vm4450_vm1, %v4449_v23 }
 0x3a6   :  { %v873_v6 = vpop.f32.mrf.mxu1  ;;  %v916_v54 = vpop.f32.mrf.mxu0 }
 0x3a7   :  { %v942_v25 = vadd.f32 %v3313_v42, %v916_v54  ;;  %v928_v8 = vadd.f32 %v3311_v48, %v873_v6 }
 0x3a8   :  { %v875_v0 = vpop.f32.mrf.mxu1  ;;  %v3735_v35 = vpop.f32.mrf.mxu0 }
 0x3a9   :  { %v935_v39 = vadd.f32 %v3312_v21, %v875_v0 }
 0x3aa   :  { %v877_v59 = vpop.f32.mrf.mxu1  ;;  %v919_v29 = vpop.f32.mrf.mxu0 }
 0x3ab   :  { %v943_v37 = vadd.f32 %v3313_v42, %v919_v29  ;;  %v929_v43 = vadd.f32 %v3311_v48, %v877_v59 }
 0x3ac   :  { %v879_v36 = vpop.f32.mrf.mxu1  ;;  %v3736_v38 = vpop.f32.mrf.mxu0 }
 0x3ad   :  { %v936_v40 = vadd.f32 %v3312_v21, %v879_v36  ;;  %v1012_v41 = vpack.c.bf16 %v943_v37, %v942_v25  ;;  %v4868_v49 = vpack.i.bf16 %v943_v37, %v942_v25  ;;  %v4014_v26 = vpack.i.bf16 %v929_v43, %v928_v8 }
 0x3ae   :  { %v964_v46 = vpack.c.bf16 %v929_v43, %v928_v8 }
 0x3af   :  { %3762 = vmatpush3.bf16.msra.mxu0 %v1012_v41  ;;  %v4009_v55 = vpack.i.bf16 %v936_v40, %v935_v39  ;;  %v988_v62 = vpack.c.bf16 %v936_v40, %v935_v39 }
 0x3b0   :  { %3773 = vmatprep.subr.bf16.mxu0 %v4449_v23 }
 0x3b1   :  { %4010 = vrot.lane.b32.xlu1 %v4009_v55, %s4451_s28  ;;  %4000 = vrot.lane.b32.xlu0 %v4009_v55, %s4452_s29  ;;  %v1021_v16 = vsel %vm1016_vm2, %v988_v62, 0 }
 0x3b2   :  { %3738 = vmatpush3.bf16.xpose.msra.mxu1 %v1021_v16 }
 0x3b3   :  { %3743 = vmatprep.subr.bf16.mxu1 %v4449_v23 }
 0x3b5   :  { %4015 = vrot.lane.b32.xlu1 %v4014_v26, %s4451_s28  ;;  %4005 = vrot.lane.b32.xlu0 %v4014_v26, %s4452_s29 }
 0x3b9   :  { %4025 = vrot.lane.b32.xlu1 %v4014_v26, %s4453_s30  ;;  %4020 = vrot.lane.b32.xlu0 %v4009_v55, %s4453_s30 }
 0x3ba   :  { %3740 = vmatmul.mubr.msk.bf16.vlgmr.msra.gmra.mxu1 %vm1016_vm2, %v964_v46 }
 0x3bb   :  { %3745 = vmatprep.mubr.msk.bf16.mxu1 %vm4450_vm1, %v4449_v23 }
 0x423   :  { %v4001_v50 = vpop.permute.xlu0 %4000  ;;  %v4011_v44 = vpop.permute.xlu1 %4010 }
 0x424   :  { %v4003_v51 = vunpack.i.h.bf16 %v4001_v50  ;;  %v4002_v53 = vunpack.i.l.bf16 %v4001_v50  ;;  %v4013_v63 = vunpack.i.h.bf16 %v4011_v44  ;;  %v4012_v2 = vunpack.i.l.bf16 %v4011_v44 }
 0x426   :  { %v989_v56 = vpack.c.bf16 %v4003_v51, %v4002_v53  ;;  %v990_v12 = vpack.c.bf16 %v4013_v63, %v4012_v2 }
 0x427   :  { %v4006_v58 = vpop.permute.xlu0 %4005  ;;  %v4016_v14 = vpop.permute.xlu1 %4015 }
 0x428   :  { %v1068_v47 = vsel %vm1016_vm2, %v989_v56, 0  ;;  %v4008_v4 = vunpack.i.h.bf16 %v4006_v58  ;;  %v4007_v10 = vunpack.i.l.bf16 %v4006_v58  ;;  %v1115_v57 = vsel %vm1016_vm2, %v990_v12, 0 }
 0x429   :  { %3744 = vmatpush3.bf16.xpose.msra.mxu1 %v1068_v47  ;;  %v4018_v17 = vunpack.i.h.bf16 %v4016_v14  ;;  %v4017_v18 = vunpack.i.l.bf16 %v4016_v14 }
 0x42a   :  { %3749 = vmatprep.subr.bf16.mxu1 %v4449_v23  ;;  %v965_v52 = vpack.c.bf16 %v4008_v4, %v4007_v10 }
 0x42b   :  { %v4021_v13 = vpop.permute.xlu0 %4020  ;;  %v966_v61 = vpack.c.bf16 %v4018_v17, %v4017_v18  ;;  %v4026_v19 = vpop.permute.xlu1 %4025 }
 0x42c   :  { %v4023_v15 = vunpack.i.h.bf16 %v4021_v13  ;;  %v4022_v3 = vunpack.i.l.bf16 %v4021_v13  ;;  %v4028_v24 = vunpack.i.h.bf16 %v4026_v19  ;;  %v4027_v1 = vunpack.i.l.bf16 %v4026_v19 }
 0x42e   :  { %v991_v60 = vpack.c.bf16 %v4023_v15, %v4022_v3  ;;  %v967_v27 = vpack.c.bf16 %v4028_v24, %v4027_v1 }
 0x430   :  { %3746 = vmatmul.mubr.msk.bf16.vlgmr.msra.gmra.mxu1 %vm1016_vm2, %v965_v52  ;;  %v1162_v22 = vsel %vm1016_vm2, %v991_v60, 0 }
 0x431   :  { %3750 = vmatpush3.bf16.xpose.msra.mxu1 %v1115_v57  ;;  %3751 = vmatprep.mubr.msk.bf16.mxu1 %vm4450_vm1, %v4449_v23 }
 0x432   :  { %3755 = vmatprep.subr.bf16.mxu1 %v4449_v23 }
 0x438   :  { %3752 = vmatmul.mubr.msk.bf16.vlgmr.msra.gmra.mxu1 %vm1016_vm2, %v966_v61 }
 0x439   :  { %3756 = vmatpush3.bf16.xpose.msra.mxu1 %v1162_v22  ;;  %3757 = vmatprep.mubr.msk.bf16.mxu1 %vm4450_vm1, %v4449_v23 }
 0x43a   :  { %3767 = vmatprep.subr.bf16.mxu1 %v4449_v23 }
 0x440   :  { %3758 = vmatmul.mubr.msk.bf16.vlgmr.msra.gmra.mxu1 %vm1016_vm2, %v967_v27 }
 0x441   :  { %3769 = vmatprep.mubr.msk.bf16.mxu1 %vm4450_vm1, %v4449_v23 }
 0x47a   :  { %v1057_v7 = vpop.f32.mrf.mxu1 }
 0x47b   :  { %v1058_v30 = vadd.f32 %v1057_v7, %v4900_v28 }
 0x47c   :  { %v3741_v5 = vpop.f32.mrf.mxu1 }
 0x47d   :  { %v1206_v33 = vsel %vm1205_vm3, %v1058_v30, -inf }
 0x47e   :  { %1207 = vmax.xlane.f32.xlu0 %v1206_v33  ;;  %v1060_v9 = vpop.f32.mrf.mxu1 }
 0x47f   :  { %v1061_v32 = vadd.f32 %v1060_v9, %v4906_v31 }
 0x480   :  { %v3742_v11 = vpop.f32.mrf.mxu1 }
 0x481   :  { %v1209_v6 = vsel %vm1205_vm3, %v1061_v32, -inf }
 0x482   :  { %1210 = vmax.xlane.f32.xlu1 %v1209_v6 }
 0x4f0   :  { %v1104_v54 = vpop.f32.mrf.mxu1 }
 0x4f1   :  { %v1105_v42 = vadd.f32 %v1104_v54, %v4900_v28 }
 0x4f2   :  { %v3747_v0 = vpop.f32.mrf.mxu1 }
 0x4f3   :  { %v1212_v35 = vsel %vm1205_vm3, %v1105_v42, -inf }
 0x4f4   :  { %1213 = vmax.xlane.f32.xlu0 %v1212_v35  ;;  %v1107_v21 = vpop.f32.mrf.mxu1 }
 0x4f5   :  { %v1108_v59 = vadd.f32 %v1107_v21, %v4906_v31 }
 0x4f6   :  { %v3748_v29 = vpop.f32.mrf.mxu1 }
 0x4f7   :  { %v1215_v25 = vsel %vm1205_vm3, %v1108_v59, -inf }
 0x4f8   :  { %1216 = vmax.xlane.f32.xlu0 %v1215_v25  ;;  %v1151_v37 = vpop.f32.mrf.mxu1 }
 0x4f9   :  { %v1152_v36 = vadd.f32 %v1151_v37, %v4900_v28 }
 0x4fa   :  { %v3753_v38 = vpop.f32.mrf.mxu1 }
 0x4fb   :  { %v1218_v39 = vsel %vm1205_vm3, %v1152_v36, -inf }
 0x4fc   :  { %1219 = vmax.xlane.f32.xlu1 %v1218_v39  ;;  %v1154_v40 = vpop.f32.mrf.mxu1 }
 0x4fd   :  { %v1155_v41 = vadd.f32 %v1154_v40, %v4906_v31 }
 0x4fe   :  { %v3754_v48 = vpop.f32.mrf.mxu1 }
 0x4ff   :  { %v1221_v43 = vsel %vm1205_vm3, %v1155_v41, -inf }
 0x500   :  { %1222 = vmax.xlane.f32.xlu0 %v1221_v43  ;;  %v1198_v55 = vpop.f32.mrf.mxu1 }
 0x501   :  { %v1199_v62 = vadd.f32 %v1198_v55, %v4900_v28 }
 0x502   :  { %v3759_v8 = vpop.f32.mrf.mxu1 }
 0x503   :  { %v1224_v16 = vsel %vm1205_vm3, %v1199_v62, -inf }
 0x504   :  { %1225 = vmax.xlane.f32.xlu1 %v1224_v16  ;;  %v1201_v26 = vpop.f32.mrf.mxu1 }
 0x505   :  { %v1202_v46 = vadd.f32 %v1201_v26, %v4906_v31 }
 0x506   :  { %v3760_v50 = vpop.f32.mrf.mxu1 }
 0x507   :  { %v1227_v51 = vsel %vm1205_vm3, %v1202_v46, -inf  ;;  %v1208_v63 = vpop.xlane.xlu0 %1207 }
 0x508   :  { %1228 = vmax.xlane.f32.xlu0 %v1227_v51  ;;  %v1230_v47 = vsub.f32 %v1058_v30, %v1208_v63 }
 0x50a   :  { %v1238_v4 = vmul.f32 1.442695, %v1230_v47 }
 0x50b   :  { %v1211_v53 = vpop.xlane.xlu1 %1210 }
 0x50c   :  { %v1231_v44 = vsub.f32 %v1061_v32, %v1211_v53 }
 0x50e   :  { %v1240_v56 = vmul.f32 1.442695, %v1231_v44 }
 0x510   :  { %4366 = vpow2.f32 %v1240_v56 }
 0x511   :  { %4368 = vpow2.f32 %v1238_v4 }
 0x515   :  { %4030 = vrot.lane.b32.xlu1 %v4868_v49, %s4452_s29 }
 0x51d   :  { %v4925_v58 = vpop.eup %4366 }
 0x51e   :  { %v1257_v2 = vsel %vm1205_vm3, %v4925_v58, 0.0  ;;  %v4369_v10 = vpop.eup %4368 }
 0x51f   :  { %1258 = vadd.xlane.f32.xlu0 %v1257_v2  ;;  %v1254_v12 = vsel %vm1205_vm3, %v4369_v10, 0.0 }
 0x539   :  { %1255 = vadd.xlane.f32.xlu1 %v1254_v12 }
 0x57d   :  { %v1214_v13 = vpop.xlane.xlu0 %1213 }
 0x57e   :  { %v1232_v52 = vsub.f32 %v1105_v42, %v1214_v13 }
 0x580   :  { %v1242_v14 = vmul.f32 1.442695, %v1232_v52 }
 0x581   :  { %v1217_v15 = vpop.xlane.xlu0 %1216 }
 0x582   :  { %4370 = vpow2.f32 %v1242_v14  ;;  %v1233_v3 = vsub.f32 %v1108_v59, %v1217_v15 }
 0x584   :  { %v1244_v57 = vmul.f32 1.442695, %v1233_v3 }
 0x585   :  { %v1220_v17 = vpop.xlane.xlu1 %1219 }
 0x586   :  { %4372 = vpow2.f32 %v1244_v57  ;;  %v1234_v18 = vsub.f32 %v1152_v36, %v1220_v17 }
 0x588   :  { %v1246_v60 = vmul.f32 1.442695, %v1234_v18 }
 0x589   :  { %v1223_v61 = vpop.xlane.xlu0 %1222 }
 0x58a   :  { %4374 = vpow2.f32 %v1246_v60  ;;  %v1235_v19 = vsub.f32 %v1155_v41, %v1223_v61 }
 0x58c   :  { %v1248_v22 = vmul.f32 1.442695, %v1235_v19 }
 0x58d   :  { %v1226_v24 = vpop.xlane.xlu1 %1225 }
 0x58e   :  { %4376 = vpow2.f32 %v1248_v22  ;;  %v1236_v1 = vsub.f32 %v1199_v62, %v1226_v24  ;;  %v4182_v24 = vld [vmem:[%s5446_s4 + $0x15c] ss:$24 sps:$4 sm:$0xff]  }
 0x58f   :  { %v4371_v27 = vpop.eup %4370 }
 0x590   :  { %v1250_v7 = vmul.f32 1.442695, %v1236_v1  ;;  %v1260_v30 = vsel %vm1205_vm3, %v4371_v27, 0.0  ;;  %v4183_v1 = vld [vmem:[%s5446_s4 + $0x12c] ss:$24 sps:$4 sm:$0xff]  }
 0x591   :  { %1261 = vadd.xlane.f32.xlu1 %v1260_v30  ;;  %v4031_v5 = vpop.permute.xlu1 %4030  ;;  %v1229_v33 = vpop.xlane.xlu0 %1228 }
 0x592   :  { %4378 = vpow2.f32 %v1250_v7  ;;  %v4033_v9 = vunpack.i.h.bf16 %v4031_v5  ;;  %v4032_v32 = vunpack.i.l.bf16 %v4031_v5  ;;  %v1237_v11 = vsub.f32 %v1202_v46, %v1229_v33 }
 0x593   :  { %v4373_v6 = vpop.eup %4372 }
 0x594   :  { %v1013_v54 = vpack.c.bf16 %v4033_v9, %v4032_v32  ;;  %v1252_v42 = vmul.f32 1.442695, %v1237_v11  ;;  %v1263_v0 = vsel %vm1205_vm3, %v4373_v6, 0.0  ;;  %v4185_v9 = vld [vmem:[%s5446_s4 + $0xcc] ss:$24 sps:$4 sm:$0xff]  }
 0x595   :  { %1264 = vadd.xlane.f32.xlu0 %v1263_v0  ;;  %v4186_v32 = vld [vmem:[%s5446_s4 + $0x9c] ss:$24 sps:$4 sm:$0xff]  }
 0x596   :  { %4380 = vpow2.f32 %v1252_v42  ;;  %3768 = vmatpush3.bf16.msra.mxu1 %v1013_v54  ;;  %v4187_v42 = vld [vmem:[%s5446_s4 + $0x6c] ss:$24 sps:$4 sm:$0xff]  }
 0x597   :  { %v4375_v35 = vpop.eup %4374  ;;  %3779 = vmatprep.subr.bf16.mxu1 %v4449_v23 }
 0x598   :  { %v1266_v21 = vsel %vm1205_vm3, %v4375_v35, 0.0 }
 0x599   :  { %1267 = vadd.xlane.f32.xlu1 %v1266_v21  ;;  %v4188_v21 = vld [vmem:[%s5446_s4 + $0x3c] ss:$24 sps:$4 sm:$0xff]  }
 0x59b   :  { %v4377_v59 = vpop.eup %4376 }
 0x59c   :  { %v1269_v29 = vsel %vm1205_vm3, %v4377_v59, 0.0 }
 0x59d   :  { %1270 = vadd.xlane.f32.xlu0 %v1269_v29 }
 0x59f   :  { %v4379_v25 = vpop.eup %4378 }
 0x5a0   :  { %v1272_v37 = vsel %vm1205_vm3, %v4379_v25, 0.0 }
 0x5a1   :  { %1273 = vadd.xlane.f32.xlu1 %v1272_v37 }
 0x5a3   :  { %v4381_v36 = vpop.eup %4380 }
 0x5a4   :  { %v1275_v38 = vsel %vm1205_vm3, %v4381_v36, 0.0 }
 0x5a5   :  { %1276 = vadd.xlane.f32.xlu0 %v1275_v38 }
 0x5a8   :  { %v1259_v39 = vpop.xlane.xlu0 %1258 }
 0x5a9   :  { %4382 = vrcp.f32 %v1259_v39  ;;  %v4190_v39 = vld [vmem:[%s5446_s4 + $0x160] ss:$24 sps:$4 sm:$0xff]  }
 0x5b2   :  { %4040 = vrot.lane.b32.xlu1 %v4868_v49, %s4453_s30 }
 0x5b6   :  { %v4383_v41 = vpop.eup %4382 }
 0x5b7   :  { %v1287_v55 = vmul.f32 %v4383_v41, %v4925_v58  ;;  %v4191_v41 = vld [vmem:[%s5446_s4 + $0x130] ss:$24 sps:$4 sm:$0xff]  }
 0x5bb   :  { %4035 = vrot.lane.b32.xlu0 %v4868_v49, %s4451_s28 }
 0x5c2   :  { %v1256_v40 = vpop.xlane.xlu1 %1255 }
 0x5c3   :  { %4384 = vrcp.f32 %v1256_v40 }
 0x5d0   :  { %v4385_v48 = vpop.eup %4384 }
 0x5d1   :  { %v1286_v43 = vmul.f32 %v4385_v48, %v4369_v10 }
 0x5d3   :  { %v1294_v62 = vpack.c.bf16 %v1287_v55, %v1286_v43 }
 0x5d5   :  { %3764 = vmatmul.mubr.msk.bf16.vlgmr.msra.gmra.mxu0 %vm1205_vm3, %v1294_v62  ;;  %v4192_v62 = vld [vmem:[%s5446_s4 + $0x100] ss:$24 sps:$4 sm:$0xff]  }
 0x5d6   :  { %3775 = vmatprep.mubr.msk.bf16.mxu0 %vm4450_vm1, %v4449_v23 }
 0x61a   :  { %v1262_v8 = vpop.xlane.xlu1 %1261 }
 0x61b   :  { %4386 = vrcp.f32 %v1262_v8 }
 0x61e   :  { %v1265_v16 = vpop.xlane.xlu0 %1264 }
 0x61f   :  { %4388 = vrcp.f32 %v1265_v16  ;;  %v4193_v16 = vld [vmem:[%s5446_s4 + $0xd0] ss:$24 sps:$4 sm:$0xff]  }
 0x622   :  { %v1268_v49 = vpop.xlane.xlu1 %1267 }
 0x623   :  { %4390 = vrcp.f32 %v1268_v49  ;;  %v4194_v49 = vld [vmem:[%s5446_s4 + $0xa0] ss:$24 sps:$4 sm:$0xff]  }
 0x626   :  { %v1271_v26 = vpop.xlane.xlu0 %1270 }
 0x627   :  { %4392 = vrcp.f32 %v1271_v26  ;;  %v4195_v26 = vld [vmem:[%s5446_s4 + $0x70] ss:$24 sps:$4 sm:$0xff]  }
 0x628   :  { %v4387_v46 = vpop.eup %4386 }
 0x629   :  { %v1288_v53 = vmul.f32 %v4387_v46, %v4371_v27  ;;  %v4184_v27 = vld [vmem:[%s5446_s4 + $0xfc] ss:$24 sps:$4 sm:$0xff]  }
 0x62a   :  { %v1274_v50 = vpop.xlane.xlu1 %1273 }
 0x62b   :  { %4394 = vrcp.f32 %v1274_v50 }
 0x62c   :  { %v4389_v51 = vpop.eup %4388 }
 0x62d   :  { %v1289_v44 = vmul.f32 %v4389_v51, %v4373_v6 }
 0x62e   :  { %v4041_v56 = vpop.permute.xlu1 %4040  ;;  %v1277_v58 = vpop.xlane.xlu0 %1276 }
 0x62f   :  { %v4043_v63 = vunpack.i.h.bf16 %v4041_v56  ;;  %v4042_v2 = vunpack.i.l.bf16 %v4041_v56  ;;  %4396 = vrcp.f32 %v1277_v58  ;;  %v1295_v47 = vpack.c.bf16 %v1289_v44, %v1288_v53 }
 0x630   :  { %v4391_v10 = vpop.eup %4390 }
 0x631   :  { %v1015_v4 = vpack.c.bf16 %v4043_v63, %v4042_v2  ;;  %3770 = vmatmul.mubr.msk.bf16.vlgmr.msra.gmra.mxu1 %vm1205_vm3, %v1295_v47  ;;  %v1290_v3 = vmul.f32 %v4391_v10, %v4375_v35 }
 0x632   :  { %v4036_v12 = vpop.permute.xlu0 %4035  ;;  %3781 = vmatprep.mubr.msk.bf16.mxu1 %vm4450_vm1, %v4449_v23 }
 0x633   :  { %v4038_v13 = vunpack.i.h.bf16 %v4036_v12  ;;  %v4037_v52 = vunpack.i.l.bf16 %v4036_v12  ;;  %3780 = vmatpush3.bf16.msra.mxu1 %v1015_v4 }
 0x634   :  { %v4393_v14 = vpop.eup %4392  ;;  %3805 = vmatprep.subr.bf16.mxu1 %v4449_v23 }
 0x635   :  { %v1014_v15 = vpack.c.bf16 %v4038_v13, %v4037_v52  ;;  %v1291_v57 = vmul.f32 %v4393_v14, %v4377_v59 }
 0x637   :  { %3774 = vmatpush3.bf16.msra.mxu0 %v1014_v15  ;;  %v1296_v17 = vpack.c.bf16 %v1291_v57, %v1290_v3  ;;  %v4196_v15 = vld [vmem:[%s5446_s4 + $0x40] ss:$24 sps:$4 sm:$0xff]   ;;  %v4197_v3 = vld [vmem:[%s5446_s4 + $0x10] ss:$24 sps:$4 sm:$0xff]   ;;  %v4198_v57 = vld [vmem:[%s5446_s4 + $0x164] ss:$24 sps:$4 sm:$0xff]  }
 0x638   :  { %3785 = vmatprep.subr.bf16.mxu0 %v4449_v23  ;;  %v4395_v18 = vpop.eup %4394 }
 0x639   :  { %v1292_v61 = vmul.f32 %v4395_v18, %v4379_v25  ;;  %v4189_v25 = vld [vmem:[%s5446_s4 + $0xc] ss:$24 sps:$4 sm:$0xff]   ;;  %v3322_v18 = vld [vmem:[%s5447_s5 + $0x3] ss:$0 sm:$0xff] }
 0x63a   :  { %3776 = vmatmul.mubr.msk.bf16.vlgmr.msra.gmra.mxu0 %vm1205_vm3, %v1296_v17 }
 0x63b   :  { %3801 = vmatprep.mubr.msk.bf16.mxu0 %vm4450_vm1, %v4449_v23  ;;  %3786 = vmatpush3.bf16.msra.mxu0 %v4182_v24 }
 0x63c   :  { %v4397_v60 = vpop.eup %4396  ;;  %3787 = vmatprep.subr.bf16.mxu0 %v4449_v23 }
 0x63d   :  { %v1293_v19 = vmul.f32 %v4397_v60, %v4381_v36 }
 0x63f   :  { %v1297_v22 = vpack.c.bf16 %v1293_v19, %v1292_v61  ;;  %3788 = vmatpush3.bf16.msra.mxu0 %v4183_v1 }
 0x640   :  { %3789 = vmatprep.subr.bf16.mxu0 %v4449_v23 }
 0x641   :  { %3782 = vmatmul.mubr.msk.bf16.vlgmr.msra.gmra.mxu1 %vm1205_vm3, %v1297_v22 }
 0x642   :  { %3821 = vmatprep.mubr.msk.bf16.mxu1 %vm4450_vm1, %v4449_v23  ;;  %3806 = vmatpush3.bf16.msra.mxu1 %v4190_v39 }
 0x643   :  { %3790 = vmatpush3.bf16.msra.mxu0 %v4184_v27  ;;  %3807 = vmatprep.subr.bf16.mxu1 %v4449_v23  ;;  %v4199_v27 = vld [vmem:[%s5446_s4 + $0x134] ss:$24 sps:$4 sm:$0xff]  }
 0x644   :  { %3791 = vmatprep.subr.bf16.mxu0 %v4449_v23 }
 0x646   :  { %3808 = vmatpush3.bf16.msra.mxu1 %v4191_v41  ;;  %v3342_v41 = vld [vmem:[%s5447_s5 + $0x5] ss:$0 sm:$0xff] }
 0x647   :  { %3792 = vmatpush3.bf16.msra.mxu0 %v4185_v9  ;;  %3809 = vmatprep.subr.bf16.mxu1 %v4449_v23  ;;  %v4205_v9 = vld [vmem:[%s5446_s4 + $0x14] ss:$24 sps:$4 sm:$0xff]  }
 0x648   :  { %3793 = vmatprep.subr.bf16.mxu0 %v4449_v23 }
 0x64a   :  { %3810 = vmatpush3.bf16.msra.mxu1 %v4192_v62 }
 0x64b   :  { %3794 = vmatpush3.bf16.msra.mxu0 %v4186_v32  ;;  %3811 = vmatprep.subr.bf16.mxu1 %v4449_v23  ;;  %v3331_v32 = vld [vmem:[%s5447_s5 + $0x4] ss:$0 sm:$0xff] }
 0x64c   :  { %3795 = vmatprep.subr.bf16.mxu0 %v4449_v23 }
 0x64e   :  { %3812 = vmatpush3.bf16.msra.mxu1 %v4193_v16 }
 0x64f   :  { %3796 = vmatpush3.bf16.msra.mxu0 %v4187_v42  ;;  %3813 = vmatprep.subr.bf16.mxu1 %v4449_v23 }
 0x650   :  { %3797 = vmatprep.subr.bf16.mxu0 %v4449_v23 }
 0x652   :  { %3814 = vmatpush3.bf16.msra.mxu1 %v4194_v49 }
 0x653   :  { %3798 = vmatpush3.bf16.msra.mxu0 %v4188_v21  ;;  %3815 = vmatprep.subr.bf16.mxu1 %v4449_v23 }
 0x654   :  { %3799 = vmatprep.subr.bf16.mxu0 %v4449_v23 }
 0x656   :  { %3816 = vmatpush3.bf16.msra.mxu1 %v4195_v26 }
 0x657   :  { %3800 = vmatpush3.bf16.msra.mxu0 %v4189_v25  ;;  %3817 = vmatprep.subr.bf16.mxu1 %v4449_v23 }
 0x658   :  { %3825 = vmatprep.subr.bf16.mxu0 %v4449_v23 }
 0x65a   :  { %3818 = vmatpush3.bf16.msra.mxu1 %v4196_v15  ;;  %v4226_v15 = vld [vmem:[%s5446_s4 + $0x1e0] ss:$24 sps:$4 sm:$0xff]  }
 0x65b   :  { %3819 = vmatprep.subr.bf16.mxu1 %v4449_v23 }
 0x65e   :  { %3820 = vmatpush3.bf16.msra.mxu1 %v4197_v3  ;;  %v4229_v3 = vld [vmem:[%s5446_s4 + $0x1e8] ss:$24 sps:$4 sm:$0xff]  }
 0x695   :  { %v4968_v7 = vpop.f32.mrf.mxu0 }
 0x697   :  { %v3765_v30 = vpop.f32.mrf.mxu0 }
 0x698   :  { %v4201_v30 = vld [vmem:[%s5446_s4 + $0xd4] ss:$24 sps:$4 sm:$0xff]  }
 0x699   :  { %v1338_v5 = vpop.f32.mrf.mxu0 }
 0x69b   :  { %v3766_v33 = vpop.f32.mrf.mxu0 }
 0x69c   :  { %v4204_v33 = vld [vmem:[%s5446_s4 + $0x44] ss:$24 sps:$4 sm:$0xff]  }
 0x6f1   :  { %v1379_v11 = vpop.f32.mrf.mxu1 }
 0x6f3   :  { %v3771_v6 = vpop.f32.mrf.mxu1 }
 0x6f5   :  { %v1382_v54 = vpop.f32.mrf.mxu1 }
 0x6f6   :  { %v4044_v0 = vpack.i.bf16 %v1382_v54, %v1379_v11 }
 0x6f7   :  { %v3772_v35 = vpop.f32.mrf.mxu1 }
 0x6f8   :  { %4045 = vrot.lane.b32.xlu1 %v4044_v0, %s4453_s30 }
 0x6fa   :  { %v1423_v59 = vpop.f32.mrf.mxu0 }
 0x6fc   :  { %v3777_v29 = vpop.f32.mrf.mxu0 }
 0x6fe   :  { %v1426_v37 = vpop.f32.mrf.mxu0 }
 0x6ff   :  { %v4049_v36 = vpack.i.bf16 %v1426_v37, %v1423_v59 }
 0x700   :  { %v3778_v38 = vpop.f32.mrf.mxu0 }
 0x701   :  { %4050 = vrot.lane.b32.xlu0 %v4049_v36, %s4451_s28  ;;  %v1467_v40 = vpop.f32.mrf.mxu1 }
 0x703   :  { %v3783_v48 = vpop.f32.mrf.mxu1 }
 0x705   :  { %v1470_v43 = vpop.f32.mrf.mxu1 }
 0x706   :  { %v4054_v55 = vpack.i.bf16 %v1470_v43, %v1467_v40 }
 0x707   :  { %v3784_v8 = vpop.f32.mrf.mxu1 }
 0x708   :  { %4055 = vrot.lane.b32.xlu1 %v4054_v55, %s4452_s29 }
 0x76a   :  { %v4046_v46 = vpop.permute.xlu1 %4045 }
 0x76b   :  { %v4048_v51 = vunpack.i.h.bf16 %v4046_v46  ;;  %v4047_v53 = vunpack.i.l.bf16 %v4046_v46 }
 0x76d   :  { %v1499_v63 = vsel %vm1016_vm2, %v1338_v5, %v4048_v51  ;;  %v1498_v2 = vsel %vm1016_vm2, %v4968_v7, %v4047_v53  ;;  %v4200_v7 = vld [vmem:[%s5446_s4 + $0x104] ss:$24 sps:$4 sm:$0xff]   ;;  %v4203_v5 = vld [vmem:[%s5446_s4 + $0x74] ss:$24 sps:$4 sm:$0xff]   ;;  %v4206_v51 = vld [vmem:[%s5446_s4 + $0x2d0] ss:$24 sps:$4 sm:$0xff]  }
 0x76e   :  { %v4212_v53 = vld [vmem:[%s5446_s4 + $0x2a4] ss:$24 sps:$4 sm:$0xff]  }
 0x773   :  { %v4051_v50 = vpop.permute.xlu0 %4050 }
 0x774   :  { %v4053_v44 = vunpack.i.h.bf16 %v4051_v50  ;;  %v4052_v56 = vunpack.i.l.bf16 %v4051_v50 }
 0x776   :  { %v1500_v10 = vsel %vm515_vm0, %v1498_v2, %v4052_v56  ;;  %v1501_v12 = vsel %vm515_vm0, %v1499_v63, %v4053_v44  ;;  %v4210_v44 = vld [vmem:[%s5446_s4 + $0x2a0] ss:$24 sps:$4 sm:$0xff]   ;;  %v4214_v63 = vld [vmem:[%s5446_s4 + $0x270] ss:$24 sps:$4 sm:$0xff]  }
 0x777   :  { %v4213_v56 = vld [vmem:[%s5446_s4 + $0x2a8] ss:$24 sps:$4 sm:$0xff]   ;;  %v4217_v2 = vld [vmem:[%s5446_s4 + $0x278] ss:$24 sps:$4 sm:$0xff]  }
 0x77a   :  { %v4056_v58 = vpop.permute.xlu1 %4055 }
 0x77b   :  { %v4058_v47 = vunpack.i.h.bf16 %v4056_v58  ;;  %v4057_v4 = vunpack.i.l.bf16 %v4056_v58  ;;  %v4216_v58 = vld [vmem:[%s5446_s4 + $0x274] ss:$24 sps:$4 sm:$0xff]  }
 0x77d   :  { %v1504_v13 = vsel %vm1502_vm4, %v1501_v12, %v4058_v47  ;;  %v1503_v52 = vsel %vm1502_vm4, %v1500_v10, %v4057_v4  ;;  %v4220_v47 = vld [vmem:[%s5446_s4 + $0x244] ss:$24 sps:$4 sm:$0xff]   ;;  %v4218_v4 = vld [vmem:[%s5446_s4 + $0x240] ss:$24 sps:$4 sm:$0xff]   ;;  %v4224_v12 = vld [vmem:[%s5446_s4 + $0x214] ss:$24 sps:$4 sm:$0xff]  }
 0x77e   :  { %v1505_v14 = vpack.c.bf16 %v1504_v13, %v1503_v52  ;;  %v4221_v10 = vld [vmem:[%s5446_s4 + $0x248] ss:$24 sps:$4 sm:$0xff]   ;;  %v4225_v52 = vld [vmem:[%s5446_s4 + $0x218] ss:$24 sps:$4 sm:$0xff]  }
 0x77f   :  { %v4222_v13 = vld [vmem:[%s5446_s4 + $0x210] ss:$24 sps:$4 sm:$0xff]  }
 0x780   :  { %3802 = vmatmul.mubr.bf16.vlgmr.msra.gmra.mxu0 %v1505_v14  ;;  %v4228_v14 = vld [vmem:[%s5446_s4 + $0x1e4] ss:$24 sps:$4 sm:$0xff]  }
 0x781   :  { %3841 = vmatprep.mubr.msk.bf16.mxu0 %vm4450_vm1, %v4449_v23  ;;  %3826 = vmatpush3.bf16.msra.mxu0 %v4198_v57  ;;  %v4232_v57 = vld [vmem:[%s5446_s4 + $0x1b4] ss:$24 sps:$4 sm:$0xff]  }
 0x782   :  { %3827 = vmatprep.subr.bf16.mxu0 %v4449_v23 }
 0x785   :  { %3828 = vmatpush3.bf16.msra.mxu0 %v4199_v27 }
 0x786   :  { %3829 = vmatprep.subr.bf16.mxu0 %v4449_v23 }
 0x789   :  { %3830 = vmatpush3.bf16.msra.mxu0 %v4200_v7 }
 0x78a   :  { %3831 = vmatprep.subr.bf16.mxu0 %v4449_v23 }
 0x78d   :  { %3832 = vmatpush3.bf16.msra.mxu0 %v4201_v30 }
 0x78e   :  { %3833 = vmatprep.subr.bf16.mxu0 %v4449_v23 }
 0x840   :  { %v1609_v17 = vpop.f32.mrf.mxu0 }
 0x841   :  { %v1610_v19 = vadd.f32 %v3322_v18, %v1609_v17  ;;  %v4230_v17 = vld [vmem:[%s5446_s4 + $0x1b0] ss:$24 sps:$4 sm:$0xff]  }
 0x842   :  { %v3803_v60 = vpop.f32.mrf.mxu0 }
 0x843   :  { %v4236_v60 = vld [vmem:[%s5446_s4 + $0x184] ss:$24 sps:$4 sm:$0xff]  }
 0x844   :  { %v1612_v61 = vpop.f32.mrf.mxu0 }
 0x845   :  { %v1613_v22 = vadd.f32 %v3322_v18, %v1612_v61  ;;  %v4233_v18 = vld [vmem:[%s5446_s4 + $0x1b8] ss:$24 sps:$4 sm:$0xff]  }
 0x846   :  { %v3804_v24 = vpop.f32.mrf.mxu0  ;;  %v4234_v61 = vld [vmem:[%s5446_s4 + $0x180] ss:$24 sps:$4 sm:$0xff]  }
 0x847   :  { %v1616_v1 = vpack.c.bf16 %v1613_v22, %v1610_v19  ;;  %v4237_v19 = vld [vmem:[%s5446_s4 + $0x188] ss:$24 sps:$4 sm:$0xff]  }
 0x849   :  { %3822 = vmatmul.mubr.bf16.vlgmr.msra.gmra.mxu1 %v1616_v1 }
 0x84a   :  { %2085 = vmatprep.mubr.bf16.mxu1 %v4448_v20  ;;  %v4202_v20 = vld [vmem:[%s5446_s4 + $0xa4] ss:$24 sps:$4 sm:$0xff]  }
 0x84b   :  { %3834 = vmatpush3.bf16.msra.mxu0 %v4202_v20 }
 0x84c   :  { %3835 = vmatprep.subr.bf16.mxu0 %v4449_v23 }
 0x84f   :  { %3836 = vmatpush3.bf16.msra.mxu0 %v4203_v5 }
 0x850   :  { %3837 = vmatprep.subr.bf16.mxu0 %v4449_v23 }
 0x853   :  { %3838 = vmatpush3.bf16.msra.mxu0 %v4204_v33 }
 0x854   :  { %3839 = vmatprep.subr.bf16.mxu0 %v4449_v23 }
 0x857   :  { %3840 = vmatpush3.bf16.msra.mxu0 %v4205_v9 }
 0x858   :  { %3845 = vmatprep.subr.bf16.mxu0 %v4449_v23 }
 0x909   :  { %v1720_v11 = vpop.f32.mrf.mxu1 }
 0x90a   :  { %v1721_v6 = vadd.f32 %v3331_v32, %v1720_v11 }
 0x90b   :  { %v3823_v54 = vpop.f32.mrf.mxu1 }
 0x90c   :  { %v1729_v42 = vmul.f32 1.442695, %v1721_v6  ;;  %vm1727_vm5 = vcmp.gt.f32.partialorder %v1721_v6, 0.0 }
 0x90d   :  { %v1723_v0 = vpop.f32.mrf.mxu1 }
 0x90e   :  { %4398 = vpow2.f32 %v1729_v42  ;;  %v1724_v35 = vadd.f32 %v3331_v32, %v1723_v0 }
 0x90f   :  { %v3824_v21 = vpop.f32.mrf.mxu1 }
 0x910   :  { %v1731_v59 = vmul.f32 1.442695, %v1724_v35  ;;  %vm1728_vm6 = vcmp.gt.f32.partialorder %v1724_v35, 0.0  ;;  %v3351_v21 = vld [vmem:[%s5447_s5 + $0x6] ss:$0 sm:$0xff] }
 0x912   :  { %4400 = vpow2.f32 %v1731_v59 }
 0x91b   :  { %v4399_v29 = vpop.eup %4398 }
 0x91c   :  { %v3340_v25 = vadd.f32 -1.0, %v4399_v29 }
 0x91e   :  { %v1735_v38 = vsel %vm1727_vm5, %v1721_v6, %v3340_v25 }
 0x91f   :  { %v4401_v37 = vpop.eup %4400 }
 0x920   :  { %v3341_v36 = vadd.f32 -1.0, %v4401_v37 }
 0x922   :  { %v1736_v39 = vsel %vm1728_vm6, %v1724_v35, %v3341_v36  ;;  %v3352_v36 = vld [vmem:[%s5447_s5 + $0x7] ss:$0 sm:$0xff] }
 0x923   :  { %v1737_v40 = vpack.c.bf16 %v1736_v39, %v1735_v38 }
 0x925   :  { %3842 = vmatmul.mubr.bf16.vlgmr.msra.gmra.mxu0 %v1737_v40 }
 0x926   :  { %3861 = vmatprep.mubr.msk.bf16.mxu0 %vm4450_vm1, %v4449_v23 }
 0x9e5   :  { %v1841_v48 = vpop.f32.mrf.mxu0 }
 0x9e6   :  { %v1842_v43 = vadd.f32 %v3342_v41, %v1841_v48 }
 0x9e7   :  { %v3843_v55 = vpop.f32.mrf.mxu0 }
 0x9e8   :  { %v5078_v62 = vadd.f32 %v1842_v43, %v4849_v34  ;;  %v4208_v34 = vld [vmem:[%s5446_s4 + $0x2d4] ss:$24 sps:$4 sm:$0xff]   ;;  %v3410_v55 = vld [vmem:[%s5447_s5 + $0x8] ss:$0 sm:$0xff] }
 0x9e9   :  { %v1844_v8 = vpop.f32.mrf.mxu0  ;;  %2053 = vmatprep.subr.bf16.mxu1 %v4208_v34 }
 0x9ea   :  { %v1845_v16 = vadd.f32 %v3342_v41, %v1844_v8  ;;  %1850 = vadd.xlane.f32.xlu0 %v5078_v62  ;;  %v1857_v46 = vmul.f32 %v5078_v62, %v5078_v62  ;;  %2054 = vmatpush1.bf16.msra.mxu1 %v4206_v51 }
 0x9eb   :  { %v3844_v49 = vpop.f32.mrf.mxu0  ;;  %2055 = vmatprep.subr.bf16.mxu1 %v4212_v53 }
 0x9ec   :  { %v5082_v26 = vadd.f32 %v1845_v16, %v4851_v45  ;;  %v4209_v45 = vld [vmem:[%s5446_s4 + $0x2d8] ss:$24 sps:$4 sm:$0xff]   ;;  %v3412_v49 = vld [vmem:[%s5447_s5 + $0x9] ss:$0 sm:$0xff] }
 0x9ed   :  { %3846 = vmatpush3.bf16.msra.mxu0 %v4209_v45 }
 0x9ee   :  { %1859 = vadd.xlane.f32.xlu0 %v1857_v46  ;;  %1852 = vadd.xlane.f32.xlu1 %v5082_v26  ;;  %v1858_v50 = vmul.f32 %v5082_v26, %v5082_v26 }
 0x9ef   :  { %3847 = vmatprep.subr.bf16.mxu0 %v4449_v23  ;;  %2056 = vmatpush1.bf16.msra.mxu1 %v4210_v44 }
 0x9f0   :  { %2057 = vmatprep.subr.bf16.mxu1 %v4216_v58 }
 0x9f1   :  { %3848 = vmatpush3.bf16.msra.mxu0 %v4213_v56 }
 0x9f2   :  { %1861 = vadd.xlane.f32.xlu0 %v1858_v50  ;;  %3849 = vmatprep.subr.bf16.mxu0 %v4449_v23 }
 0x9f3   :  { %2058 = vmatpush1.bf16.msra.mxu1 %v4214_v63 }
 0x9f4   :  { %2059 = vmatprep.subr.bf16.mxu1 %v4220_v47 }
 0x9f5   :  { %3850 = vmatpush3.bf16.msra.mxu0 %v4217_v2 }
 0x9f6   :  { %3851 = vmatprep.subr.bf16.mxu0 %v4449_v23 }
 0x9f7   :  { %2060 = vmatpush1.bf16.msra.mxu1 %v4218_v4 }
 0x9f8   :  { %2061 = vmatprep.subr.bf16.mxu1 %v4224_v12 }
 0x9f9   :  { %3852 = vmatpush3.bf16.msra.mxu0 %v4221_v10 }
 0x9fa   :  { %3853 = vmatprep.subr.bf16.mxu0 %v4449_v23 }
 0x9fb   :  { %2062 = vmatpush1.bf16.msra.mxu1 %v4222_v13 }
 0x9fc   :  { %2063 = vmatprep.subr.bf16.mxu1 %v4228_v14 }
 0x9fd   :  { %3854 = vmatpush3.bf16.msra.mxu0 %v4225_v52 }
 0x9fe   :  { %3855 = vmatprep.subr.bf16.mxu0 %v4449_v23 }
 0x9ff   :  { %2064 = vmatpush1.bf16.msra.mxu1 %v4226_v15 }
 0xa00   :  { %2065 = vmatprep.subr.bf16.mxu1 %v4232_v57 }
 0xa01   :  { %3856 = vmatpush3.bf16.msra.mxu0 %v4229_v3 }
 0xa02   :  { %3857 = vmatprep.subr.bf16.mxu0 %v4449_v23 }
 0xa03   :  { %2066 = vmatpush1.bf16.msra.mxu1 %v4230_v17 }
 0xa04   :  { %2067 = vmatprep.subr.bf16.mxu1 %v4236_v60 }
 0xa05   :  { %3858 = vmatpush3.bf16.msra.mxu0 %v4233_v18 }
 0xa06   :  { %3859 = vmatprep.subr.bf16.mxu0 %v4449_v23 }
 0xa07   :  { %2068 = vmatpush1.bf16.msra.mxu1 %v4234_v61 }
 0xa08   :  { %3865 = vmatprep.subr.bf16.mxu1 %v4449_v23 }
 0xa09   :  { %3860 = vmatpush3.bf16.msra.mxu0 %v4237_v19 }
 0xa0a   :  { %3889 = vmatprep.subr.bf16.mxu0 %v4449_v23 }
 0xa73   :  { %v1851_v22 = vpop.xlane.xlu0 %1850 }
 0xa74   :  { %v1855_v24 = vmul.f32 0.0078125, %v1851_v22 }
 0xa76   :  { %v1865_v7 = vmul.f32 %v1855_v24, %v1855_v24  ;;  %v1869_v42 = vsub.f32 %v5078_v62, %v1855_v24  ;;  %v3414_v62 = vld [vmem:[%s5447_s5 + $0xa] ss:$0 sm:$0xff] }
 0xa77   :  { %v1860_v1 = vpop.xlane.xlu0 %1859  ;;  %v1853_v27 = vpop.xlane.xlu1 %1852 }
 0xa78   :  { %v1863_v30 = vmul.f32 0.0078125, %v1860_v1  ;;  %v1856_v20 = vmul.f32 0.0078125, %v1853_v27 }
 0xa7a   :  { %v1867_v5 = vsub.f32 %v1863_v30, %v1865_v7  ;;  %v1866_v32 = vmul.f32 %v1856_v20, %v1856_v20  ;;  %v1870_v59 = vsub.f32 %v5082_v26, %v1856_v20 }
 0xa7b   :  { %v1862_v33 = vpop.xlane.xlu0 %1861 }
 0xa7c   :  { %v1871_v9 = vadd.f32 1e-05, %v1867_v5  ;;  %v1864_v11 = vmul.f32 0.0078125, %v1862_v33 }
 0xa7e   :  { %4402 = vrsqrt.f32 %v1871_v9  ;;  %v1868_v6 = vsub.f32 %v1864_v11, %v1866_v32 }
 0xa80   :  { %v1872_v54 = vadd.f32 1e-05, %v1868_v6 }
 0xa82   :  { %4404 = vrsqrt.f32 %v1872_v54 }
 0xa8b   :  { %v4403_v0 = vpop.eup %4402 }
 0xa8c   :  { %v1875_v35 = vmul.f32 %v4403_v0, %v1869_v42 }
 0xa8e   :  { %v1882_v37 = vmul.f32 %v3351_v21, %v1875_v35 }
 0xa8f   :  { %v4405_v29 = vpop.eup %4404 }
 0xa90   :  { %v1876_v25 = vmul.f32 %v4405_v29, %v1870_v59  ;;  %v5178_v39 = vadd.f32 %v3352_v36, %v1882_v37 }
 0xa92   :  { %v1883_v38 = vmul.f32 %v3351_v21, %v1876_v25 }
 0xa94   :  { %v5180_v40 = vadd.f32 %v3352_v36, %v1883_v38 }
 0xa96   :  { %v1891_v41 = vpack.c.bf16 %v5180_v40, %v5178_v39 }
 0xa98   :  { %2086 = vmatmul.mubr.bf16.vlgmr.msra.gmra.mxu1 %v1891_v41  ;;  %3862 = vmatmul.mubr.bf16.vlgmr.msra.gmra.mxu0 %v1891_v41 }
 0xa99   :  { %3867 = vmatprep.mubr.msk.bf16.mxu1 %vm4450_vm1, %v4449_v23  ;;  %3891 = vmatprep.mubr.msk.bf16.mxu0 %vm4450_vm1, %v4449_v23 }
 0xb58   :  { %v2087_v48 = vpop.f32.mrf.mxu1  ;;  %v2130_v43 = vpop.f32.mrf.mxu0 }
 0xb59   :  { %v2143_v50 = vadd.f32 %v3410_v55, %v2087_v48  ;;  %v2157_v34 = vadd.f32 %v3414_v62, %v2130_v43 }
 0xb5a   :  { %v2089_v8 = vpop.f32.mrf.mxu1  ;;  %v3863_v16 = vpop.f32.mrf.mxu0 }
 0xb5b   :  { %v2150_v56 = vadd.f32 %v3412_v49, %v2089_v8 }
 0xb5c   :  { %v2091_v26 = vpop.f32.mrf.mxu1  ;;  %v2133_v46 = vpop.f32.mrf.mxu0 }
 0xb5d   :  { %v2144_v51 = vadd.f32 %v3410_v55, %v2091_v26  ;;  %v2158_v45 = vadd.f32 %v3414_v62, %v2133_v46 }
 0xb5e   :  { %v2093_v53 = vpop.f32.mrf.mxu1  ;;  %v3864_v44 = vpop.f32.mrf.mxu0 }
 0xb5f   :  { %v2151_v58 = vadd.f32 %v3412_v49, %v2093_v53  ;;  %v2227_v63 = vpack.c.bf16 %v2158_v45, %v2157_v34  ;;  %v4064_v2 = vpack.i.bf16 %v2144_v51, %v2143_v50  ;;  %v5197_v47 = vpack.i.bf16 %v2158_v45, %v2157_v34  ;;  %v4447_v53 = vld [vmem:[%s5448_s6 + $0x8] sm:$0xff] }
 0xb60   :  { %v2179_v13 = vpack.c.bf16 %v2144_v51, %v2143_v50  ;;  %v4446_v50 = vld [vmem:[%s5448_s6] sm:$0xff] }
 0xb61   :  { %3890 = vmatpush3.bf16.msra.mxu0 %v2227_v63  ;;  %4065 = vrot.lane.b32.xlu0 %v4064_v2, %s4452_s29  ;;  %v4059_v4 = vpack.i.bf16 %v2151_v58, %v2150_v56  ;;  %v2203_v10 = vpack.c.bf16 %v2151_v58, %v2150_v56 }
 0xb62   :  { %3901 = vmatprep.subr.bf16.mxu0 %v4449_v23 }
 0xb63   :  { %4060 = vrot.lane.b32.xlu1 %v4059_v4, %s4452_s29  ;;  %v2235_v12 = vsel %vm1016_vm2, %v2203_v10, 0 }
 0xb64   :  { %3866 = vmatpush3.bf16.xpose.msra.mxu1 %v2235_v12 }
 0xb65   :  { %4080 = vrot.lane.b32.xlu0 %v4059_v4, %s4453_s30  ;;  %3871 = vmatprep.subr.bf16.mxu1 %v4449_v23 }
 0xb67   :  { %4070 = vrot.lane.b32.xlu1 %v4059_v4, %s4451_s28 }
 0xb6b   :  { %4075 = vrot.lane.b32.xlu1 %v4064_v2, %s4451_s28  ;;  %3868 = vmatmul.mubr.msk.bf16.vlgmr.msra.gmra.mxu1 %vm1016_vm2, %v2179_v13 }
 0xb6c   :  { %3873 = vmatprep.mubr.msk.bf16.mxu1 %vm4450_vm1, %v4449_v23 }
 0xb6f   :  { %4085 = vrot.lane.b32.xlu1 %v4064_v2, %s4453_s30 }
 0xbd3   :  { %v4066_v57 = vpop.permute.xlu0 %4065 }
 0xbd4   :  { %v4068_v19 = vunpack.i.h.bf16 %v4066_v57  ;;  %v4067_v22 = vunpack.i.l.bf16 %v4066_v57 }
 0xbd5   :  { %v4061_v52 = vpop.permute.xlu1 %4060 }
 0xbd6   :  { %v4063_v14 = vunpack.i.h.bf16 %v4061_v52  ;;  %v4062_v15 = vunpack.i.l.bf16 %v4061_v52  ;;  %v2180_v27 = vpack.c.bf16 %v4068_v19, %v4067_v22 }
 0xbd7   :  { %v4081_v1 = vpop.permute.xlu0 %4080 }
 0xbd8   :  { %v2204_v3 = vpack.c.bf16 %v4063_v14, %v4062_v15  ;;  %v4083_v30 = vunpack.i.h.bf16 %v4081_v1  ;;  %v4082_v20 = vunpack.i.l.bf16 %v4081_v1 }
 0xbd9   :  { %v4071_v17 = vpop.permute.xlu1 %4070 }
 0xbda   :  { %v4073_v18 = vunpack.i.h.bf16 %v4071_v17  ;;  %v4072_v60 = vunpack.i.l.bf16 %v4071_v17  ;;  %v2282_v61 = vsel %vm1016_vm2, %v2204_v3, 0  ;;  %v2206_v32 = vpack.c.bf16 %v4083_v30, %v4082_v20 }
 0xbdb   :  { %3872 = vmatpush3.bf16.xpose.msra.mxu1 %v2282_v61 }
 0xbdc   :  { %3877 = vmatprep.subr.bf16.mxu1 %v4449_v23  ;;  %v2205_v24 = vpack.c.bf16 %v4073_v18, %v4072_v60  ;;  %v2376_v54 = vsel %vm1016_vm2, %v2206_v32, 0 }
 0xbdd   :  { %v4076_v7 = vpop.permute.xlu1 %4075 }
 0xbde   :  { %v2329_v5 = vsel %vm1016_vm2, %v2205_v24, 0  ;;  %v4078_v33 = vunpack.i.h.bf16 %v4076_v7  ;;  %v4077_v9 = vunpack.i.l.bf16 %v4076_v7 }
 0xbe0   :  { %v2181_v11 = vpack.c.bf16 %v4078_v33, %v4077_v9 }
 0xbe1   :  { %v4086_v6 = vpop.permute.xlu1 %4085 }
 0xbe2   :  { %3874 = vmatmul.mubr.msk.bf16.vlgmr.msra.gmra.mxu1 %vm1016_vm2, %v2180_v27  ;;  %v4088_v42 = vunpack.i.h.bf16 %v4086_v6  ;;  %v4087_v0 = vunpack.i.l.bf16 %v4086_v6 }
 0xbe3   :  { %3878 = vmatpush3.bf16.xpose.msra.mxu1 %v2329_v5  ;;  %3879 = vmatprep.mubr.msk.bf16.mxu1 %vm4450_vm1, %v4449_v23 }
 0xbe4   :  { %3883 = vmatprep.subr.bf16.mxu1 %v4449_v23  ;;  %v2182_v35 = vpack.c.bf16 %v4088_v42, %v4087_v0 }
 0xbea   :  { %3880 = vmatmul.mubr.msk.bf16.vlgmr.msra.gmra.mxu1 %vm1016_vm2, %v2181_v11 }
 0xbeb   :  { %3884 = vmatpush3.bf16.xpose.msra.mxu1 %v2376_v54  ;;  %3885 = vmatprep.mubr.msk.bf16.mxu1 %vm4450_vm1, %v4449_v23 }
 0xbec   :  { %3895 = vmatprep.subr.bf16.mxu1 %v4449_v23 }
 0xbf2   :  { %3886 = vmatmul.mubr.msk.bf16.vlgmr.msra.gmra.mxu1 %vm1016_vm2, %v2182_v35 }
 0xbf3   :  { %3897 = vmatprep.mubr.msk.bf16.mxu1 %vm4450_vm1, %v4449_v23 }
 0xc2b   :  { %v2271_v21 = vpop.f32.mrf.mxu1 }
 0xc2c   :  { %v2272_v59 = vadd.f32 %v2271_v21, %v4900_v28 }
 0xc2d   :  { %v3869_v29 = vpop.f32.mrf.mxu1 }
 0xc2e   :  { %v2419_v25 = vsel %vm1205_vm3, %v2272_v59, -inf }
 0xc2f   :  { %2420 = vmax.xlane.f32.xlu0 %v2419_v25  ;;  %v2274_v37 = vpop.f32.mrf.mxu1 }
 0xc30   :  { %v2275_v36 = vadd.f32 %v2274_v37, %v4906_v31 }
 0xc31   :  { %v3870_v38 = vpop.f32.mrf.mxu1 }
 0xc32   :  { %v2422_v41 = vsel %vm1205_vm3, %v2275_v36, -inf }
 0xc33   :  { %2423 = vmax.xlane.f32.xlu1 %v2422_v41 }
 0xca2   :  { %v2318_v48 = vpop.f32.mrf.mxu1 }
 0xca3   :  { %v2319_v43 = vadd.f32 %v2318_v48, %v4900_v28 }
 0xca4   :  { %v3875_v55 = vpop.f32.mrf.mxu1 }
 0xca5   :  { %v2425_v62 = vsel %vm1205_vm3, %v2319_v43, -inf }
 0xca6   :  { %2426 = vmax.xlane.f32.xlu0 %v2425_v62  ;;  %v2321_v8 = vpop.f32.mrf.mxu1 }
 0xca7   :  { %v2322_v16 = vadd.f32 %v2321_v8, %v4906_v31 }
 0xca8   :  { %v3876_v49 = vpop.f32.mrf.mxu1 }
 0xca9   :  { %v2428_v26 = vsel %vm1205_vm3, %v2322_v16, -inf }
 0xcaa   :  { %2429 = vmax.xlane.f32.xlu0 %v2428_v26  ;;  %v2365_v46 = vpop.f32.mrf.mxu1 }
 0xcab   :  { %v2366_v34 = vadd.f32 %v4446_v50, %v2365_v46 }
 0xcac   :  { %v3881_v51 = vpop.f32.mrf.mxu1 }
 0xcad   :  { %v2431_v28 = vsel %vm1205_vm3, %v2366_v34, -inf }
 0xcae   :  { %2432 = vmax.xlane.f32.xlu1 %v2431_v28  ;;  %v2368_v45 = vpop.f32.mrf.mxu1 }
 0xcaf   :  { %v2369_v31 = vadd.f32 %v4447_v53, %v2368_v45 }
 0xcb0   :  { %v3882_v44 = vpop.f32.mrf.mxu1 }
 0xcb1   :  { %v2434_v56 = vsel %vm1205_vm3, %v2369_v31, -inf }
 0xcb2   :  { %2435 = vmax.xlane.f32.xlu0 %v2434_v56  ;;  %v2412_v58 = vpop.f32.mrf.mxu1 }
 0xcb3   :  { %v2413_v63 = vadd.f32 %v4446_v50, %v2412_v58 }
 0xcb4   :  { %v3887_v2 = vpop.f32.mrf.mxu1 }
 0xcb5   :  { %v2437_v4 = vsel %vm1205_vm3, %v2413_v63, -inf }
 0xcb6   :  { %2438 = vmax.xlane.f32.xlu1 %v2437_v4  ;;  %v2415_v10 = vpop.f32.mrf.mxu1 }
 0xcb7   :  { %v2416_v12 = vadd.f32 %v4447_v53, %v2415_v10 }
 0xcb8   :  { %v3888_v13 = vpop.f32.mrf.mxu1  ;;  %v2421_v17 = vpop.xlane.xlu0 %2420 }
 0xcb9   :  { %v2440_v52 = vsel %vm1205_vm3, %v2416_v12, -inf  ;;  %v2443_v60 = vsub.f32 %v2272_v59, %v2421_v17 }
 0xcba   :  { %2441 = vmax.xlane.f32.xlu0 %v2440_v52 }
 0xcbb   :  { %v2451_v61 = vmul.f32 1.442695, %v2443_v60 }
 0xcbc   :  { %v2424_v14 = vpop.xlane.xlu1 %2423 }
 0xcbd   :  { %v2444_v15 = vsub.f32 %v2275_v36, %v2424_v14 }
 0xcbf   :  { %v2453_v3 = vmul.f32 1.442695, %v2444_v15 }
 0xcc1   :  { %4406 = vpow2.f32 %v2453_v3 }
 0xcc2   :  { %4408 = vpow2.f32 %v2451_v61 }
 0xcc7   :  { %4090 = vrot.lane.b32.xlu1 %v5197_v47, %s4452_s29 }
 0xcce   :  { %v5246_v57 = vpop.eup %4406 }
 0xccf   :  { %v2470_v18 = vsel %vm1205_vm3, %v5246_v57, 0.0  ;;  %v4409_v19 = vpop.eup %4408 }
 0xcd0   :  { %2471 = vadd.xlane.f32.xlu0 %v2470_v18  ;;  %v2467_v22 = vsel %vm1205_vm3, %v4409_v19, 0.0 }
 0xceb   :  { %2468 = vadd.xlane.f32.xlu1 %v2467_v22 }
 0xd2f   :  { %v2427_v24 = vpop.xlane.xlu0 %2426 }
 0xd30   :  { %v2445_v1 = vsub.f32 %v2319_v43, %v2427_v24 }
 0xd32   :  { %v2455_v27 = vmul.f32 1.442695, %v2445_v1 }
 0xd33   :  { %v2430_v7 = vpop.xlane.xlu0 %2429 }
 0xd34   :  { %4410 = vpow2.f32 %v2455_v27  ;;  %v2446_v30 = vsub.f32 %v2322_v16, %v2430_v7 }
 0xd36   :  { %v2457_v20 = vmul.f32 1.442695, %v2446_v30 }
 0xd37   :  { %v2433_v5 = vpop.xlane.xlu1 %2432 }
 0xd38   :  { %4412 = vpow2.f32 %v2457_v20  ;;  %v2447_v33 = vsub.f32 %v2366_v34, %v2433_v5 }
 0xd3a   :  { %v2459_v9 = vmul.f32 1.442695, %v2447_v33 }
 0xd3b   :  { %v2436_v32 = vpop.xlane.xlu0 %2435 }
 0xd3c   :  { %4414 = vpow2.f32 %v2459_v9  ;;  %v2448_v11 = vsub.f32 %v2369_v31, %v2436_v32  ;;  %v4238_v32 = vld [vmem:[%s5446_s4 + $0x2dc] ss:$24 sps:$4 sm:$0xff]  }
 0xd3e   :  { %v2461_v6 = vmul.f32 1.442695, %v2448_v11  ;;  %v4239_v11 = vld [vmem:[%s5446_s4 + $0x2ac] ss:$24 sps:$4 sm:$0xff]  }
 0xd3f   :  { %v2439_v54 = vpop.xlane.xlu1 %2438 }
 0xd40   :  { %4416 = vpow2.f32 %v2461_v6  ;;  %v2449_v42 = vsub.f32 %v2413_v63, %v2439_v54  ;;  %v4240_v6 = vld [vmem:[%s5446_s4 + $0x27c] ss:$24 sps:$4 sm:$0xff]  }
 0xd41   :  { %v4411_v0 = vpop.eup %4410 }
 0xd42   :  { %v2463_v35 = vmul.f32 1.442695, %v2449_v42  ;;  %v2473_v21 = vsel %vm1205_vm3, %v4411_v0, 0.0 }
 0xd43   :  { %2474 = vadd.xlane.f32.xlu1 %v2473_v21  ;;  %v4091_v59 = vpop.permute.xlu1 %4090  ;;  %v2442_v29 = vpop.xlane.xlu0 %2441  ;;  %v4241_v21 = vld [vmem:[%s5446_s4 + $0x24c] ss:$24 sps:$4 sm:$0xff]  }
 0xd44   :  { %4418 = vpow2.f32 %v2463_v35  ;;  %v4093_v25 = vunpack.i.h.bf16 %v4091_v59  ;;  %v4092_v37 = vunpack.i.l.bf16 %v4091_v59  ;;  %v2450_v36 = vsub.f32 %v2416_v12, %v2442_v29  ;;  %v4242_v59 = vld [vmem:[%s5446_s4 + $0x21c] ss:$24 sps:$4 sm:$0xff]  }
 0xd45   :  { %v4413_v38 = vpop.eup %4412 }
 0xd46   :  { %v2228_v41 = vpack.c.bf16 %v4093_v25, %v4092_v37  ;;  %v2465_v48 = vmul.f32 1.442695, %v2450_v36  ;;  %v2476_v43 = vsel %vm1205_vm3, %v4413_v38, 0.0 }
 0xd47   :  { %2477 = vadd.xlane.f32.xlu0 %v2476_v43 }
 0xd48   :  { %4420 = vpow2.f32 %v2465_v48  ;;  %3896 = vmatpush3.bf16.msra.mxu1 %v2228_v41  ;;  %v4244_v48 = vld [vmem:[%s5446_s4 + $0x1bc] ss:$24 sps:$4 sm:$0xff]  }
 0xd49   :  { %v4415_v55 = vpop.eup %4414  ;;  %3907 = vmatprep.subr.bf16.mxu1 %v4449_v23 }
 0xd4a   :  { %v2479_v62 = vsel %vm1205_vm3, %v4415_v55, 0.0 }
 0xd4b   :  { %2480 = vadd.xlane.f32.xlu1 %v2479_v62 }
 0xd4d   :  { %v4417_v8 = vpop.eup %4416 }
 0xd4e   :  { %v2482_v16 = vsel %vm1205_vm3, %v4417_v8, 0.0 }
 0xd4f   :  { %2483 = vadd.xlane.f32.xlu0 %v2482_v16 }
 0xd51   :  { %v4419_v49 = vpop.eup %4418 }
 0xd52   :  { %v2485_v26 = vsel %vm1205_vm3, %v4419_v49, 0.0 }
 0xd53   :  { %2486 = vadd.xlane.f32.xlu1 %v2485_v26  ;;  %v4246_v26 = vld [vmem:[%s5446_s4 + $0x2e0] ss:$24 sps:$4 sm:$0xff]  }
 0xd55   :  { %v4421_v46 = vpop.eup %4420 }
 0xd56   :  { %v2488_v50 = vsel %vm1205_vm3, %v4421_v46, 0.0 }
 0xd57   :  { %2489 = vadd.xlane.f32.xlu0 %v2488_v50  ;;  %v4247_v50 = vld [vmem:[%s5446_s4 + $0x2b0] ss:$24 sps:$4 sm:$0xff]  }
 0xd59   :  { %v2472_v34 = vpop.xlane.xlu0 %2471 }
 0xd5a   :  { %4422 = vrcp.f32 %v2472_v34 }
 0xd64   :  { %4100 = vrot.lane.b32.xlu1 %v5197_v47, %s4453_s30 }
 0xd67   :  { %v4423_v28 = vpop.eup %4422 }
 0xd68   :  { %v2500_v31 = vmul.f32 %v4423_v28, %v5246_v57 }
 0xd6d   :  { %4095 = vrot.lane.b32.xlu0 %v5197_v47, %s4451_s28 }
 0xd74   :  { %v2469_v51 = vpop.xlane.xlu1 %2468 }
 0xd75   :  { %4424 = vrcp.f32 %v2469_v51 }
 0xd82   :  { %v4425_v45 = vpop.eup %4424 }
 0xd83   :  { %v2499_v53 = vmul.f32 %v4425_v45, %v4409_v19  ;;  %v4248_v45 = vld [vmem:[%s5446_s4 + $0x280] ss:$24 sps:$4 sm:$0xff]  }
 0xd85   :  { %v2507_v44 = vpack.c.bf16 %v2500_v31, %v2499_v53  ;;  %v4249_v31 = vld [vmem:[%s5446_s4 + $0x250] ss:$24 sps:$4 sm:$0xff]  }
 0xd87   :  { %3892 = vmatmul.mubr.msk.bf16.vlgmr.msra.gmra.mxu0 %vm1205_vm3, %v2507_v44  ;;  %v4250_v44 = vld [vmem:[%s5446_s4 + $0x220] ss:$24 sps:$4 sm:$0xff]  }
 0xd88   :  { %3903 = vmatprep.mubr.msk.bf16.mxu0 %vm4450_vm1, %v4449_v23 }
 0xdcc   :  { %v2475_v56 = vpop.xlane.xlu1 %2474 }
 0xdcd   :  { %4426 = vrcp.f32 %v2475_v56  ;;  %v4251_v56 = vld [vmem:[%s5446_s4 + $0x1f0] ss:$24 sps:$4 sm:$0xff]  }
 0xdd0   :  { %v2478_v58 = vpop.xlane.xlu0 %2477 }
 0xdd1   :  { %4428 = vrcp.f32 %v2478_v58 }
 0xdd4   :  { %v2481_v47 = vpop.xlane.xlu1 %2480 }
 0xdd5   :  { %4430 = vrcp.f32 %v2481_v47 }
 0xdd8   :  { %v2484_v63 = vpop.xlane.xlu0 %2483 }
 0xdd9   :  { %4432 = vrcp.f32 %v2484_v63 }
 0xdda   :  { %v4427_v2 = vpop.eup %4426 }
 0xddb   :  { %v2501_v12 = vmul.f32 %v4427_v2, %v4411_v0 }
 0xddc   :  { %v2487_v4 = vpop.xlane.xlu1 %2486 }
 0xddd   :  { %4434 = vrcp.f32 %v2487_v4 }
 0xdde   :  { %v4429_v10 = vpop.eup %4428 }
 0xddf   :  { %v2502_v13 = vmul.f32 %v4429_v10, %v4413_v38  ;;  %v4243_v38 = vld [vmem:[%s5446_s4 + $0x1ec] ss:$24 sps:$4 sm:$0xff]  }
 0xde0   :  { %v4101_v52 = vpop.permute.xlu1 %4100  ;;  %v2490_v14 = vpop.xlane.xlu0 %2489 }
 0xde1   :  { %v4103_v15 = vunpack.i.h.bf16 %v4101_v52  ;;  %v4102_v3 = vunpack.i.l.bf16 %v4101_v52  ;;  %4436 = vrcp.f32 %v2490_v14  ;;  %v2508_v57 = vpack.c.bf16 %v2502_v13, %v2501_v12 }
 0xde2   :  { %v4431_v18 = vpop.eup %4430 }
 0xde3   :  { %v2230_v17 = vpack.c.bf16 %v4103_v15, %v4102_v3  ;;  %3898 = vmatmul.mubr.msk.bf16.vlgmr.msra.gmra.mxu1 %vm1205_vm3, %v2508_v57  ;;  %v2503_v1 = vmul.f32 %v4431_v18, %v4415_v55 }
 0xde4   :  { %v4096_v60 = vpop.permute.xlu0 %4095  ;;  %3909 = vmatprep.mubr.msk.bf16.mxu1 %vm4450_vm1, %v4449_v23 }
 0xde5   :  { %v4098_v61 = vunpack.i.h.bf16 %v4096_v60  ;;  %v4097_v19 = vunpack.i.l.bf16 %v4096_v60  ;;  %3908 = vmatpush3.bf16.msra.mxu1 %v2230_v17 }
 0xde6   :  { %v4433_v22 = vpop.eup %4432  ;;  %3933 = vmatprep.subr.bf16.mxu1 %v4449_v23 }
 0xde7   :  { %v2229_v24 = vpack.c.bf16 %v4098_v61, %v4097_v19  ;;  %v2504_v27 = vmul.f32 %v4433_v22, %v4417_v8  ;;  %v4245_v8 = vld [vmem:[%s5446_s4 + $0x18c] ss:$24 sps:$4 sm:$0xff]   ;;  %v4252_v61 = vld [vmem:[%s5446_s4 + $0x1c0] ss:$24 sps:$4 sm:$0xff]   ;;  %v4253_v19 = vld [vmem:[%s5446_s4 + $0x190] ss:$24 sps:$4 sm:$0xff]  }
 0xde8   :  { %v4254_v22 = vld [vmem:[%s5446_s4 + $0x2e4] ss:$24 sps:$4 sm:$0xff]  }
 0xde9   :  { %3902 = vmatpush3.bf16.msra.mxu0 %v2229_v24  ;;  %v2509_v7 = vpack.c.bf16 %v2504_v27, %v2503_v1  ;;  %v3440_v1 = vld [vmem:[%s5447_s5 + $0xb] ss:$0 sm:$0xff] }
 0xdea   :  { %3913 = vmatprep.subr.bf16.mxu0 %v4449_v23  ;;  %v4435_v30 = vpop.eup %4434 }
 0xdeb   :  { %v2505_v5 = vmul.f32 %v4435_v30, %v4419_v49 }
 0xdec   :  { %3904 = vmatmul.mubr.msk.bf16.vlgmr.msra.gmra.mxu0 %vm1205_vm3, %v2509_v7 }
 0xded   :  { %3929 = vmatprep.mubr.msk.bf16.mxu0 %vm4450_vm1, %v4449_v23  ;;  %3914 = vmatpush3.bf16.msra.mxu0 %v4238_v32  ;;  %v4256_v32 = vld [vmem:[%s5446_s4 + $0x284] ss:$24 sps:$4 sm:$0xff]  }
 0xdee   :  { %v4437_v20 = vpop.eup %4436  ;;  %3915 = vmatprep.subr.bf16.mxu0 %v4449_v23 }
 0xdef   :  { %v2506_v33 = vmul.f32 %v4437_v20, %v4421_v46 }
 0xdf1   :  { %v2510_v9 = vpack.c.bf16 %v2506_v33, %v2505_v5  ;;  %3916 = vmatpush3.bf16.msra.mxu0 %v4239_v11  ;;  %v4257_v11 = vld [vmem:[%s5446_s4 + $0x254] ss:$24 sps:$4 sm:$0xff]  }
 0xdf2   :  { %3917 = vmatprep.subr.bf16.mxu0 %v4449_v23 }
 0xdf3   :  { %3910 = vmatmul.mubr.msk.bf16.vlgmr.msra.gmra.mxu1 %vm1205_vm3, %v2510_v9  ;;  %v4255_v9 = vld [vmem:[%s5446_s4 + $0x2b4] ss:$24 sps:$4 sm:$0xff]  }
 0xdf4   :  { %3949 = vmatprep.mubr.msk.bf16.mxu1 %vm4450_vm1, %v4449_v23  ;;  %3934 = vmatpush3.bf16.msra.mxu1 %v4246_v26  ;;  %v3494_v26 = vld [vmem:[%s5447_s5 + $0xd] ss:$0 sm:$0xff] }
 0xdf5   :  { %3918 = vmatpush3.bf16.msra.mxu0 %v4240_v6  ;;  %3935 = vmatprep.subr.bf16.mxu1 %v4449_v23  ;;  %v4258_v6 = vld [vmem:[%s5446_s4 + $0x224] ss:$24 sps:$4 sm:$0xff]  }
 0xdf6   :  { %3919 = vmatprep.subr.bf16.mxu0 %v4449_v23 }
 0xdf8   :  { %3936 = vmatpush3.bf16.msra.mxu1 %v4247_v50 }
 0xdf9   :  { %3920 = vmatpush3.bf16.msra.mxu0 %v4241_v21  ;;  %3937 = vmatprep.subr.bf16.mxu1 %v4449_v23 }
 0xdfa   :  { %3921 = vmatprep.subr.bf16.mxu0 %v4449_v23 }
 0xdfc   :  { %3938 = vmatpush3.bf16.msra.mxu1 %v4248_v45 }
 0xdfd   :  { %3922 = vmatpush3.bf16.msra.mxu0 %v4242_v59  ;;  %3939 = vmatprep.subr.bf16.mxu1 %v4449_v23 }
 0xdfe   :  { %3923 = vmatprep.subr.bf16.mxu0 %v4449_v23 }
 0xe00   :  { %3940 = vmatpush3.bf16.msra.mxu1 %v4249_v31 }
 0xe01   :  { %3924 = vmatpush3.bf16.msra.mxu0 %v4243_v38  ;;  %3941 = vmatprep.subr.bf16.mxu1 %v4449_v23 }
 0xe02   :  { %3925 = vmatprep.subr.bf16.mxu0 %v4449_v23 }
 0xe04   :  { %3942 = vmatpush3.bf16.msra.mxu1 %v4250_v44 }
 0xe05   :  { %3926 = vmatpush3.bf16.msra.mxu0 %v4244_v48  ;;  %3943 = vmatprep.subr.bf16.mxu1 %v4449_v23 }
 0xe06   :  { %3927 = vmatprep.subr.bf16.mxu0 %v4449_v23 }
 0xe08   :  { %3944 = vmatpush3.bf16.msra.mxu1 %v4251_v56 }
 0xe09   :  { %3928 = vmatpush3.bf16.msra.mxu0 %v4245_v8  ;;  %3945 = vmatprep.subr.bf16.mxu1 %v4449_v23 }
 0xe0a   :  { %3953 = vmatprep.subr.bf16.mxu0 %v4449_v23 }
 0xe0c   :  { %3946 = vmatpush3.bf16.msra.mxu1 %v4252_v61 }
 0xe0d   :  { %3947 = vmatprep.subr.bf16.mxu1 %v4449_v23 }
 0xe10   :  { %3948 = vmatpush3.bf16.msra.mxu1 %v4253_v19 }
 0xe11   :  { %3973 = vmatprep.subr.bf16.mxu1 %v4449_v23 }
 0xe47   :  { %v5289_v54 = vpop.f32.mrf.mxu0 }
 0xe49   :  { %v3893_v42 = vpop.f32.mrf.mxu0 }
 0xe4a   :  { %v4260_v42 = vld [vmem:[%s5446_s4 + $0x1c4] ss:$24 sps:$4 sm:$0xff]  }
 0xe4b   :  { %v2551_v0 = vpop.f32.mrf.mxu0 }
 0xe4d   :  { %v3894_v35 = vpop.f32.mrf.mxu0 }
 0xe4e   :  { %v3466_v35 = vld [vmem:[%s5447_s5 + $0xc] ss:$0 sm:$0xff] }
 0xea3   :  { %v2592_v29 = vpop.f32.mrf.mxu1 }
 0xea5   :  { %v3899_v25 = vpop.f32.mrf.mxu1 }
 0xea7   :  { %v2595_v37 = vpop.f32.mrf.mxu1 }
 0xea8   :  { %v4104_v36 = vpack.i.bf16 %v2595_v37, %v2592_v29 }
 0xea9   :  { %v3900_v41 = vpop.f32.mrf.mxu1 }
 0xeaa   :  { %4105 = vrot.lane.b32.xlu1 %v4104_v36, %s4453_s30 }
 0xeac   :  { %v2636_v43 = vpop.f32.mrf.mxu0 }
 0xeae   :  { %v3905_v55 = vpop.f32.mrf.mxu0 }
 0xeb0   :  { %v2639_v62 = vpop.f32.mrf.mxu0 }
 0xeb1   :  { %v4109_v16 = vpack.i.bf16 %v2639_v62, %v2636_v43 }
 0xeb2   :  { %v3906_v49 = vpop.f32.mrf.mxu0 }
 0xeb3   :  { %4110 = vrot.lane.b32.xlu0 %v4109_v16, %s4451_s28  ;;  %v2680_v46 = vpop.f32.mrf.mxu1 }
 0xeb5   :  { %v3911_v34 = vpop.f32.mrf.mxu1 }
 0xeb7   :  { %v2683_v51 = vpop.f32.mrf.mxu1 }
 0xeb8   :  { %v4114_v28 = vpack.i.bf16 %v2683_v51, %v2680_v46 }
 0xeb9   :  { %v3912_v53 = vpop.f32.mrf.mxu1 }
 0xeba   :  { %4115 = vrot.lane.b32.xlu1 %v4114_v28, %s4452_s29 }
 0xf1c   :  { %v4106_v58 = vpop.permute.xlu1 %4105 }
 0xf1d   :  { %v4108_v63 = vunpack.i.h.bf16 %v4106_v58  ;;  %v4107_v2 = vunpack.i.l.bf16 %v4106_v58  ;;  %v4262_v58 = vld [vmem:[%s5449_s7 + $0x38] sm:$0xff]  }
 0xf1f   :  { %v2712_v13 = vsel %vm1016_vm2, %v2551_v0, %v4108_v63  ;;  %v2711_v52 = vsel %vm1016_vm2, %v5289_v54, %v4107_v2  ;;  %v4259_v54 = vld [vmem:[%s5446_s4 + $0x1f4] ss:$24 sps:$4 sm:$0xff]   ;;  %v4266_v63 = vld [vmem:[%s5449_s7 + $0x18] sm:$0xff]  }
 0xf20   :  { %v4261_v0 = vld [vmem:[%s5446_s4 + $0x194] ss:$24 sps:$4 sm:$0xff]  }
 0xf21   :  { %v4267_v2 = vld [vmem:[%s5449_s7 + $0x10] sm:$0xff]  }
 0xf25   :  { %v4111_v47 = vpop.permute.xlu0 %4110 }
 0xf26   :  { %v4113_v4 = vunpack.i.h.bf16 %v4111_v47  ;;  %v4112_v10 = vunpack.i.l.bf16 %v4111_v47  ;;  %v4265_v47 = vld [vmem:[%s5449_s7 + $0x20] sm:$0xff]  }
 0xf28   :  { %v2713_v3 = vsel %vm515_vm0, %v2711_v52, %v4112_v10  ;;  %v2714_v57 = vsel %vm515_vm0, %v2712_v13, %v4113_v4  ;;  %v4268_v4 = vld [vmem:[%s5449_s7 + $0x8] sm:$0xff]   ;;  %v4269_v10 = vld [vmem:[%s5449_s7] sm:$0xff]  }
 0xf2c   :  { %v4116_v12 = vpop.permute.xlu1 %4115 }
 0xf2d   :  { %v4118_v14 = vunpack.i.h.bf16 %v4116_v12  ;;  %v4117_v15 = vunpack.i.l.bf16 %v4116_v12 }
 0xf2f   :  { %v2716_v17 = vsel %vm1502_vm4, %v2714_v57, %v4118_v14  ;;  %v2715_v18 = vsel %vm1502_vm4, %v2713_v3, %v4117_v15 }
 0xf30   :  { %v2717_v60 = vpack.c.bf16 %v2716_v17, %v2715_v18 }
 0xf32   :  { %3930 = vmatmul.mubr.bf16.vlgmr.msra.gmra.mxu0 %v2717_v60 }
 0xf33   :  { %3969 = vmatprep.mubr.msk.bf16.mxu0 %vm4450_vm1, %v4449_v23  ;;  %3954 = vmatpush3.bf16.msra.mxu0 %v4254_v22 }
 0xf34   :  { %3955 = vmatprep.subr.bf16.mxu0 %v4449_v23 }
 0xf37   :  { %3956 = vmatpush3.bf16.msra.mxu0 %v4255_v9  ;;  %v3506_v9 = vld [vmem:[%s5447_s5 + $0xf] ss:$0 sm:$0xff] }
 0xf38   :  { %3957 = vmatprep.subr.bf16.mxu0 %v4449_v23 }
 0xf3b   :  { %3958 = vmatpush3.bf16.msra.mxu0 %v4256_v32 }
 0xf3c   :  { %3959 = vmatprep.subr.bf16.mxu0 %v4449_v23 }
 0xf3f   :  { %3960 = vmatpush3.bf16.msra.mxu0 %v4257_v11 }
 0xf40   :  { %3961 = vmatprep.subr.bf16.mxu0 %v4449_v23 }
 0xf43   :  { %3962 = vmatpush3.bf16.msra.mxu0 %v4258_v6 }
 0xf44   :  { %3963 = vmatprep.subr.bf16.mxu0 %v4449_v23 }
 0xf47   :  { %3964 = vmatpush3.bf16.msra.mxu0 %v4259_v54 }
 0xf48   :  { %3965 = vmatprep.subr.bf16.mxu0 %v4449_v23 }
 0xf4b   :  { %3966 = vmatpush3.bf16.msra.mxu0 %v4260_v42 }
 0xf4c   :  { %3967 = vmatprep.subr.bf16.mxu0 %v4449_v23 }
 0xf4f   :  { %3968 = vmatpush3.bf16.msra.mxu0 %v4261_v0 }
 0xff2   :  { %v2821_v24 = vpop.f32.mrf.mxu0 }
 0xff3   :  { %v2822_v30 = vadd.f32 %v3440_v1, %v2821_v24 }
 0xff4   :  { %v3931_v27 = vpop.f32.mrf.mxu0 }
 0xff6   :  { %v2824_v7 = vpop.f32.mrf.mxu0 }
 0xff7   :  { %v2825_v20 = vadd.f32 %v3440_v1, %v2824_v7  ;;  %v3504_v7 = vld [vmem:[%s5447_s5 + $0xe] ss:$0 sm:$0xff] }
 0xff8   :  { %v3932_v5 = vpop.f32.mrf.mxu0 }
 0xff9   :  { %v2828_v33 = vpack.c.bf16 %v2825_v20, %v2822_v30 }
 0xffb   :  { %3950 = vmatmul.mubr.bf16.vlgmr.msra.gmra.mxu1 %v2828_v33 }
 0xffc   :  { %3989 = vmatprep.mubr.msk.bf16.mxu1 %vm4450_vm1, %v4449_v23  ;;  %3974 = vmatpush3.bf16.msra.mxu1 %v4262_v58 }
 0xffd   :  { %3975 = vmatprep.subr.bf16.mxu1 %v4449_v23 }
0x10bb   :  { %v2932_v21 = vpop.f32.mrf.mxu1 }
0x10bc   :  { %v2933_v59 = vadd.f32 %v3466_v35, %v2932_v21 }
0x10bd   :  { %v3951_v29 = vpop.f32.mrf.mxu1 }
0x10be   :  { %v2941_v25 = vmul.f32 1.442695, %v2933_v59  ;;  %vm2939_vm7 = vcmp.gt.f32.partialorder %v2933_v59, 0.0 }
0x10bf   :  { %v2935_v37 = vpop.f32.mrf.mxu1 }
0x10c0   :  { %4438 = vpow2.f32 %v2941_v25  ;;  %v2936_v36 = vadd.f32 %v3466_v35, %v2935_v37 }
0x10c1   :  { %v3952_v38 = vpop.f32.mrf.mxu1 }
0x10c2   :  { %v2943_v41 = vmul.f32 1.442695, %v2936_v36  ;;  %vm2940_vm8 = vcmp.gt.f32.partialorder %v2936_v36, 0.0 }
0x10c4   :  { %4440 = vpow2.f32 %v2943_v41 }
0x10cd   :  { %v4439_v48 = vpop.eup %4438 }
0x10ce   :  { %v3475_v43 = vadd.f32 -1.0, %v4439_v48 }
0x10d0   :  { %v2947_v8 = vsel %vm2939_vm7, %v2933_v59, %v3475_v43 }
0x10d1   :  { %v4441_v55 = vpop.eup %4440 }
0x10d2   :  { %v3476_v62 = vadd.f32 -1.0, %v4441_v55 }
0x10d4   :  { %v2948_v16 = vsel %vm2940_vm8, %v2936_v36, %v3476_v62 }
0x10d5   :  { %v2949_v49 = vpack.c.bf16 %v2948_v16, %v2947_v8 }
0x10d7   :  { %3970 = vmatmul.mubr.bf16.vlgmr.msra.gmra.mxu0 %v2949_v49 }
0x1197   :  { %v3053_v46 = vpop.f32.mrf.mxu0 }
0x1198   :  { %v3054_v50 = vadd.f32 %v3494_v26, %v3053_v46 }
0x1199   :  { %v3971_v34 = vpop.f32.mrf.mxu0 }
0x119a   :  { %v3060_v51 = vadd.f32 %v3054_v50, %v5178_v39  ;;  %v4263_v39 = vld [vmem:[%s5449_s7 + $0x30] sm:$0xff]  }
0x119b   :  { %v3056_v28 = vpop.f32.mrf.mxu0  ;;  %3976 = vmatpush3.bf16.msra.mxu1 %v4263_v39 }
0x119c   :  { %v3057_v45 = vadd.f32 %v3494_v26, %v3056_v28  ;;  %3062 = vadd.xlane.f32.xlu0 %v3060_v51  ;;  %v3068_v44 = vmul.f32 %v3060_v51, %v3060_v51  ;;  %3977 = vmatprep.subr.bf16.mxu1 %v4449_v23 }
0x119d   :  { %v3972_v53 = vpop.f32.mrf.mxu0 }
0x119e   :  { %v3061_v31 = vadd.f32 %v3057_v45, %v5180_v40  ;;  %v4264_v40 = vld [vmem:[%s5449_s7 + $0x28] sm:$0xff]  }
0x119f   :  { %3978 = vmatpush3.bf16.msra.mxu1 %v4264_v40 }
0x11a0   :  { %3070 = vadd.xlane.f32.xlu0 %v3068_v44  ;;  %3064 = vadd.xlane.f32.xlu1 %v3061_v31  ;;  %v3069_v56 = vmul.f32 %v3061_v31, %v3061_v31 }
0x11a1   :  { %3979 = vmatprep.subr.bf16.mxu1 %v4449_v23 }
0x11a3   :  { %3980 = vmatpush3.bf16.msra.mxu1 %v4265_v47 }
0x11a4   :  { %3072 = vadd.xlane.f32.xlu0 %v3069_v56  ;;  %3981 = vmatprep.subr.bf16.mxu1 %v4449_v23 }
0x11a7   :  { %3982 = vmatpush3.bf16.msra.mxu1 %v4266_v63 }
0x11a8   :  { %3983 = vmatprep.subr.bf16.mxu1 %v4449_v23 }
0x11ab   :  { %3984 = vmatpush3.bf16.msra.mxu1 %v4267_v2 }
0x11ac   :  { %3985 = vmatprep.subr.bf16.mxu1 %v4449_v23 }
0x11af   :  { %3986 = vmatpush3.bf16.msra.mxu1 %v4268_v4 }
0x11b0   :  { %3987 = vmatprep.subr.bf16.mxu1 %v4449_v23 }
0x11b3   :  { %3988 = vmatpush3.bf16.msra.mxu1 %v4269_v10 }
0x1225   :  { %v3063_v12 = vpop.xlane.xlu0 %3062 }
0x1226   :  { %v3066_v13 = vmul.f32 0.0078125, %v3063_v12 }
0x1228   :  { %v3076_v15 = vmul.f32 %v3066_v13, %v3066_v13  ;;  %v3080_v1 = vsub.f32 %v3060_v51, %v3066_v13 }
0x1229   :  { %v3071_v52 = vpop.xlane.xlu0 %3070  ;;  %v3065_v14 = vpop.xlane.xlu1 %3064 }
0x122a   :  { %v3074_v3 = vmul.f32 0.0078125, %v3071_v52  ;;  %v3067_v57 = vmul.f32 0.0078125, %v3065_v14 }
0x122c   :  { %v3078_v17 = vsub.f32 %v3074_v3, %v3076_v15  ;;  %v3077_v61 = vmul.f32 %v3067_v57, %v3067_v57  ;;  %v3081_v30 = vsub.f32 %v3061_v31, %v3067_v57 }
0x122d   :  { %v3073_v18 = vpop.xlane.xlu0 %3072 }
0x122e   :  { %v3082_v60 = vadd.f32 1e-05, %v3078_v17  ;;  %v3075_v19 = vmul.f32 0.0078125, %v3073_v18 }
0x1230   :  { %4442 = vrsqrt.f32 %v3082_v60  ;;  %v3079_v22 = vsub.f32 %v3075_v19, %v3077_v61 }
0x1232   :  { %v3083_v24 = vadd.f32 1e-05, %v3079_v22 }
0x1234   :  { %4444 = vrsqrt.f32 %v3083_v24 }
0x123d   :  { %v4443_v27 = vpop.eup %4442 }
0x123e   :  { %v3086_v23 = vmul.f32 %v4443_v27, %v3080_v1 }
0x1240   :  { %v3093_v33 = vmul.f32 %v3504_v7, %v3086_v23 }
0x1241   :  { %v4445_v20 = vpop.eup %4444 }
0x1242   :  { %v3087_v5 = vmul.f32 %v4445_v20, %v3081_v30  ;;  %v3100_v11 = vadd.f32 %v3506_v9, %v3093_v33 }
0x1244   :  { %v3094_v32 = vmul.f32 %v3504_v7, %v3087_v5 }
0x1246   :  { %v3101_v6 = vadd.f32 %v3506_v9, %v3094_v32 }
0x1248   :  { %v3102_v54 = vpack.c.bf16 %v3101_v6, %v3100_v11 }
0x124a   :  { %3990 = vmatmul.mubr.bf16.vlgmr.msra.gmra.mxu1 %v3102_v54 }
0x130a   :  { %v3201_v42 = vpop.f32.mrf.mxu1 }
0x130b   :  { %3208 = vst [vmem:[%s5450_s8] sm:$0xff] %v3201_v42 }
0x130c   :  { %v3991_v0 = vpop.f32.mrf.mxu1 }
0x130e   :  { %v3204_v35 = vpop.f32.mrf.mxu1 }
0x130f   :  { %3209 = vst [vmem:[%s5450_s8 + $0x8] sm:$0xff] %v3204_v35 }
0x1310   :  { %v3992_v21 = vpop.f32.mrf.mxu1 }

</bundles_post_ra>
